<compile_context>
chip_gen: v7x
topology: tpu7x:2x2x1
jax: 0.10.0
libtpu: 0.0.40
codegen_flags: <defaults>
</compile_context>

<pallas_src>
import jax
import jax.numpy as jnp
from jax import lax
from jax.experimental import pallas as pl
from jax.experimental.pallas import tpu as pltpu


_TB = 128                              # batch tile (lane-dense preds/ratings blocks)
_RESIDENT_BUDGET = 12 * 1024 * 1024    # VMEM budget gate for the resident fast path
_VMEM_LIMIT = 32 * 1024 * 1024


def _make_resident_kernel(num_users, num_items, tb, b_total):
    """Small-vocab fast path: tables live in VMEM; gather = one-hot MXU matmul."""

    def kernel(uid_ref, iid_ref, rat_ref, utab_ref, itab_ref, preds_ref, sse_ref):
        t = pl.program_id(0)

        uid = uid_ref[...]                                        # (tb, 1) int32
        iid = iid_ref[...]                                        # (tb, 1) int32

        # One-hot gather on the MXU (only used when the vocab is small enough
        # that the (tb, U) one-hot and both tables fit in VMEM).
        onehot_u = (lax.broadcasted_iota(jnp.int32, (tb, num_users), 1) == uid
                    ).astype(jnp.float32)                          # (tb, U)
        onehot_i = (lax.broadcasted_iota(jnp.int32, (tb, num_items), 1) == iid
                    ).astype(jnp.float32)                          # (tb, I)
        u_vecs = jnp.dot(onehot_u, utab_ref[...],
                         precision=lax.Precision.HIGHEST,
                         preferred_element_type=jnp.float32)       # (tb, D)
        i_vecs = jnp.dot(onehot_i, itab_ref[...],
                         precision=lax.Precision.HIGHEST,
                         preferred_element_type=jnp.float32)       # (tb, D)

        # preds = rowwise dot product, stored lane-dense as (1, tb).
        preds = jnp.sum(u_vecs * i_vecs, axis=1).reshape(1, tb)
        preds_ref[...] = preds

        # Per-tile partial SSE; padded batch rows are masked out here and the
        # final sum + divide-by-B happens in the (trivial) wrapper op.
        col = lax.broadcasted_iota(jnp.int32, (1, tb), 1) + t * tb
        d = jnp.where(col < b_total, preds - rat_ref[...], 0.0)
        sse = jnp.sum(d * d, axis=1, keepdims=True)                # (1, 1)
        sse_ref[...] = sse.reshape(1, 1, 1)

    return kernel


def _make_gather_kernel(tb, b_total):
    """Large-vocab fallback: tables stay in HBM; per-row DMA gather, double-buffered
    across batch tiles (tile t prefetches tile t+1's rows while computing)."""

    def kernel(uid_ref, iid_ref, rat_ref, utab_hbm, itab_hbm,
               preds_ref, sse_ref, ubuf, ibuf, sems):
        t = pl.program_id(0)
        nt = pl.num_programs(0)
        cur = t % 2
        nxt = (t + 1) % 2

        def issue_tile(tile_idx, dst_slot):
            base = tile_idx * tb

            def body(b, carry):
                u = uid_ref[base + b]
                i = iid_ref[base + b]
                pltpu.make_async_copy(utab_hbm.at[u], ubuf.at[dst_slot, b],
                                      sems.at[0, dst_slot]).start()
                pltpu.make_async_copy(itab_hbm.at[i], ibuf.at[dst_slot, b],
                                      sems.at[1, dst_slot]).start()
                return carry

            # Bounded unroll keeps LLO visibility without a 2*tb instruction blowup.
            lax.fori_loop(0, tb, body, 0, unroll=8)

        # Prime the pipeline on the first tile.
        @pl.when(t == 0)
        def _():
            issue_tile(0, 0)

        # Prefetch the next tile's rows into the other slot before waiting, so the
        # gather DMAs for tile t+1 overlap the compute of tile t.
        @pl.when(t + 1 < nt)
        def _():
            issue_tile(t + 1, nxt)

        # Wait for this tile's row copies.  All row copies of a (table, slot) pair
        # share one DMA semaphore; we issue one row-sized wait per started copy.
        # NOTE: only the descriptor SHAPE matters for the wait, so `.at[0]` stands
        # in for whichever source row was actually copied — keep shapes in sync.
        def wait_body(b, carry):
            pltpu.make_async_copy(utab_hbm.at[0], ubuf.at[cur, b], sems.at[0, cur]).wait()
            pltpu.make_async_copy(itab_hbm.at[0], ibuf.at[cur, b], sems.at[1, cur]).wait()
            return carry

        lax.fori_loop(0, tb, wait_body, 0, unroll=8)

        prod = ubuf[cur] * ibuf[cur]                               # (tb, D)
        preds = jnp.sum(prod, axis=1).reshape(1, tb)               # (1, tb) lane-dense
        preds_ref[...] = preds

        col = lax.broadcasted_iota(jnp.int32, (1, tb), 1) + t * tb
        d = jnp.where(col < b_total, preds - rat_ref[...], 0.0)
        sse = jnp.sum(d * d, axis=1, keepdims=True)
        sse_ref[...] = sse.reshape(1, 1, 1)

    return kernel


def embedding_model_forward(user_ids, item_ids, ratings, user_table, item_table):
    """user_ids, item_ids: (B,) int; ratings: (B,) f32;
       user_table: (U, D) f32; item_table: (I, D) f32.
       Returns (preds (B,) f32, loss scalar f32)."""
    B = int(user_ids.shape[0])
    U, D = user_table.shape
    I, Di = item_table.shape
    assert Di == D

    user_table = user_table.astype(jnp.float32)
    item_table = item_table.astype(jnp.float32)

    tb = _TB
    b_pad = ((B + tb - 1) // tb) * tb
    num_tiles = b_pad // tb

    uid = user_ids.astype(jnp.int32).reshape(B)
    iid = item_ids.astype(jnp.int32).reshape(B)
    rat = ratings.astype(jnp.float32).reshape(B)
    if b_pad != B:
        pad = b_pad - B
        uid = jnp.pad(uid, (0, pad))     # padded rows gather row 0; masked from the loss
        iid = jnp.pad(iid, (0, pad))
        rat = jnp.pad(rat, (0, pad))
    rat2 = rat.reshape(1, b_pad)

    out_shape = (
        jax.ShapeDtypeStruct((1, b_pad), jnp.float32),              # preds (lane-dense)
        jax.ShapeDtypeStruct((num_tiles, 1, 1), jnp.float32),       # per-tile SSE partials
    )

    # Resident fast path: both tables + per-tile one-hot intermediates must fit in VMEM.
    resident_bytes = (U + I) * (D + tb) * 4
    use_resident = resident_bytes <= _RESIDENT_BUDGET

    if use_resident:
        kernel = _make_resident_kernel(U, I, tb, B)
        preds2, sse_part = pl.pallas_call(
            kernel,
            out_shape=out_shape,
            grid=(num_tiles,),
            in_specs=[
                pl.BlockSpec((tb, 1), lambda t: (t, 0)),    # user ids (sublane column)
                pl.BlockSpec((tb, 1), lambda t: (t, 0)),    # item ids
                pl.BlockSpec((1, tb), lambda t: (0, t)),    # ratings (lane-dense)
                pl.BlockSpec((U, D), lambda t: (0, 0)),     # user table, VMEM-resident
                pl.BlockSpec((I, D), lambda t: (0, 0)),     # item table, VMEM-resident
            ],
            out_specs=(
                pl.BlockSpec((1, tb), lambda t: (0, t)),
                pl.BlockSpec((1, 1, 1), lambda t: (t, 0, 0)),
            ),
            compiler_params=pltpu.CompilerParams(
                # Batch tiles are independent (no resident accumulator), so the axis
                # is "parallel" and can shard across both TensorCores on v7x.
                dimension_semantics=("parallel",),
                vmem_limit_bytes=_VMEM_LIMIT,
            ),
        )(uid.reshape(b_pad, 1), iid.reshape(b_pad, 1), rat2, user_table, item_table)
    else:
        kernel = _make_gather_kernel(tb, B)
        grid_spec = pltpu.PrefetchScalarGridSpec(
            num_scalar_prefetch=2,                  # uid, iid -> SMEM, drive the row DMAs
            grid=(num_tiles,),
            in_specs=[
                pl.BlockSpec((1, tb), lambda t, u, i: (0, t)),   # ratings (lane-dense)
                pl.BlockSpec(memory_space=pl.ANY),               # user table stays in HBM
                pl.BlockSpec(memory_space=pl.ANY),               # item table stays in HBM
            ],
            out_specs=[
                pl.BlockSpec((1, tb), lambda t, u, i: (0, t)),
                pl.BlockSpec((1, 1, 1), lambda t, u, i: (t, 0, 0)),
            ],
            scratch_shapes=[
                pltpu.VMEM((2, tb, D), jnp.float32),     # double-buffered user rows
                pltpu.VMEM((2, tb, D), jnp.float32),     # double-buffered item rows
                pltpu.SemaphoreType.DMA((2, 2)),         # (table, slot) shared DMA sems
            ],
        )
        preds2, sse_part = pl.pallas_call(
            kernel,
            out_shape=out_shape,
            grid_spec=grid_spec,
            compiler_params=pltpu.CompilerParams(
                # Tile t prefetches tile t+1 into the shared double buffer, so the
                # axis must run sequentially on one core.
                dimension_semantics=("arbitrary",),
                vmem_limit_bytes=_VMEM_LIMIT,
            ),
        )(uid, iid, rat2, user_table, item_table)

    preds = preds2.reshape(b_pad)[:B]
    loss = jnp.sum(sse_part) / jnp.float32(B)
    return preds, loss


if __name__ == "__main__":
    num_users, num_items, embedding_dim = 64, 64, 32
    batch = 8

    key = jax.random.PRNGKey(0)
    k_u, k_i, k_uid, k_iid, k_rat = jax.random.split(key, 5)

    # nn.Embedding default init: N(0, 1)
    user_table = jax.random.normal(k_u, (num_users, embedding_dim), dtype=jnp.float32)
    item_table = jax.random.normal(k_i, (num_items, embedding_dim), dtype=jnp.float32)

    user_ids = jax.random.randint(k_uid, (batch,), 0, num_users, dtype=jnp.int32)
    item_ids = jax.random.randint(k_iid, (batch,), 0, num_items, dtype=jnp.int32)
    ratings = jax.random.uniform(k_rat, (batch,), dtype=jnp.float32,
                                 minval=1.0, maxval=5.0)

    preds, loss = embedding_model_forward(user_ids, item_ids, ratings,
                                          user_table, item_table)
    jax.block_until_ready((preds, loss))

    # Pure-JAX reference (mirrors the PyTorch forward).
    uv = user_table[user_ids]
    iv = item_table[item_ids]
    preds_ref = jnp.sum(uv * iv, axis=1)
    loss_ref = jnp.mean((preds_ref - ratings) ** 2)

    assert jnp.allclose(preds, preds_ref, atol=1e-4, rtol=1e-4), "preds mismatch"
    assert jnp.allclose(loss, loss_ref, atol=1e-4, rtol=1e-4), "loss mismatch"

    print("KERNEL_OK")
</pallas_src>

<mosaic_0001>
module attributes {stable_mosaic.version = 11 : i64} {
  func.func @kernel(%arg0: i32, %arg1: memref<128x1xi32, #tpu.memory_space<vmem>>, %arg2: memref<128x1xi32, #tpu.memory_space<vmem>>, %arg3: memref<1x128xf32, #tpu.memory_space<vmem>>, %arg4: memref<64x32xf32, #tpu.memory_space<vmem>>, %arg5: memref<64x32xf32, #tpu.memory_space<vmem>>, %arg6: memref<1x128xf32, #tpu.memory_space<vmem>>, %arg7: memref<1x1x1xf32, #tpu.memory_space<vmem>>) attributes {dimension_semantics = [#tpu.dimension_semantics<parallel>], iteration_bounds = array<i64: 1>, scalar_prefetch = 0 : i64, scratch_operands = 0 : i64, tpu.core_type = #tpu.core_type<tc>, window_params = [{transform_indices = @transform_0, window_bounds = array<i64: 128, 1>}, {transform_indices = @transform_1, window_bounds = array<i64: 128, 1>}, {transform_indices = @transform_2, window_bounds = array<i64: 1, 128>}, {pipeline_mode = #tpu.pipeline_mode<synchronous>, transform_indices = @transform_3, window_bounds = array<i64: 64, 32>}, {pipeline_mode = #tpu.pipeline_mode<synchronous>, transform_indices = @transform_4, window_bounds = array<i64: 64, 32>}, {transform_indices = @transform_5, window_bounds = array<i64: 1, 128>}, {transform_indices = @transform_6, window_bounds = array<i64: 1, 1, 1>}]} {
    %c0 = arith.constant 0 : index
    %c0_0 = arith.constant 0 : index
    %0 = vector.load %arg1[%c0, %c0_0] : memref<128x1xi32, #tpu.memory_space<vmem>>, vector<128x1xi32>
    %c0_1 = arith.constant 0 : index
    %c0_2 = arith.constant 0 : index
    %1 = vector.load %arg2[%c0_1, %c0_2] : memref<128x1xi32, #tpu.memory_space<vmem>>, vector<128x1xi32>
    %2 = tpu.iota {dimensions = array<i32: 1>} : vector<128x64xi32>
    %3 = vector.broadcast %0 : vector<128x1xi32> to vector<128x64xi32>
    %4 = arith.cmpi eq, %2, %3 : vector<128x64xi32>
    %5 = arith.extui %4 : vector<128x64xi1> to vector<128x64xi32>
    %6 = arith.sitofp %5 : vector<128x64xi32> to vector<128x64xf32>
    %7 = tpu.iota {dimensions = array<i32: 1>} : vector<128x64xi32>
    %8 = vector.broadcast %1 : vector<128x1xi32> to vector<128x64xi32>
    %9 = arith.cmpi eq, %7, %8 : vector<128x64xi32>
    %10 = arith.extui %9 : vector<128x64xi1> to vector<128x64xi32>
    %11 = arith.sitofp %10 : vector<128x64xi32> to vector<128x64xf32>
    %c0_3 = arith.constant 0 : index
    %c0_4 = arith.constant 0 : index
    %12 = vector.load %arg4[%c0_3, %c0_4] : memref<64x32xf32, #tpu.memory_space<vmem>>, vector<64x32xf32>
    %cst = arith.constant dense<0.000000e+00> : vector<128x32xf32>
    %13 = tpu.matmul %6, %12, %cst {dimension_numbers = #tpu.dot_dimension_numbers<[1], [0], [0], [1], [0, 0, 1, 1], [], []>, precision = #tpu.contract_precision<fp32>} : vector<128x64xf32>, vector<64x32xf32>, vector<128x32xf32> -> vector<128x32xf32>
    %c0_5 = arith.constant 0 : index
    %c0_6 = arith.constant 0 : index
    %14 = vector.load %arg5[%c0_5, %c0_6] : memref<64x32xf32, #tpu.memory_space<vmem>>, vector<64x32xf32>
    %cst_7 = arith.constant dense<0.000000e+00> : vector<128x32xf32>
    %15 = tpu.matmul %11, %14, %cst_7 {dimension_numbers = #tpu.dot_dimension_numbers<[1], [0], [0], [1], [0, 0, 1, 1], [], []>, precision = #tpu.contract_precision<fp32>} : vector<128x64xf32>, vector<64x32xf32>, vector<128x32xf32> -> vector<128x32xf32>
    %16 = arith.mulf %13, %15 : vector<128x32xf32>
    %cst_8 = arith.constant dense<0.000000e+00> : vector<128xf32>
    %17 = vector.multi_reduction <add>, %16, %cst_8 [1] : vector<128x32xf32> to vector<128xf32>
    %18 = vector.shape_cast %17 : vector<128xf32> to vector<1x128xf32>
    %c0_9 = arith.constant 0 : index
    %c0_10 = arith.constant 0 : index
    %19 = vector.load %arg6[%c0_9, %c0_10] : memref<1x128xf32, #tpu.memory_space<vmem>>, vector<1x128xf32>
    tpu.vector_store %arg6[%c0_9, %c0_10], %18 {strides = array<i32>} : memref<1x128xf32, #tpu.memory_space<vmem>>, vector<1x128xf32>,
    %20 = tpu.iota {dimensions = array<i32: 1>} : vector<1x128xi32>
    %c128_i32 = arith.constant 128 : i32
    %21 = arith.muli %arg0, %c128_i32 : i32
    %22 = vector.broadcast %21 : i32 to vector<1x128xi32>
    %23 = arith.addi %20, %22 : vector<1x128xi32>
    %c8_i32 = arith.constant 8 : i32
    %24 = vector.broadcast %c8_i32 : i32 to vector<1x128xi32>
    %25 = arith.cmpi slt, %23, %24 : vector<1x128xi32>
    %c0_11 = arith.constant 0 : index
    %c0_12 = arith.constant 0 : index
    %26 = vector.load %arg3[%c0_11, %c0_12] : memref<1x128xf32, #tpu.memory_space<vmem>>, vector<1x128xf32>
    %27 = arith.subf %18, %26 : vector<1x128xf32>
    %cst_13 = arith.constant 0.000000e+00 : f32
    %28 = vector.broadcast %cst_13 : f32 to vector<1x128xf32>
    %29 = arith.select %25, %27, %28 : vector<1x128xi1>, vector<1x128xf32>
    %30 = arith.mulf %29, %29 : vector<1x128xf32>
    %cst_14 = arith.constant dense<0.000000e+00> : vector<1xf32>
    %31 = vector.multi_reduction <add>, %30, %cst_14 [1] : vector<1x128xf32> to vector<1xf32>
    %32 = vector.shape_cast %31 : vector<1xf32> to vector<1x1xf32>
    %33 = vector.shape_cast %32 : vector<1x1xf32> to vector<1x1x1xf32>
    %c0_15 = arith.constant 0 : index
    %c0_16 = arith.constant 0 : index
    %c0_17 = arith.constant 0 : index
    %34 = vector.load %arg7[%c0_15, %c0_16, %c0_17] : memref<1x1x1xf32, #tpu.memory_space<vmem>>, vector<1x1x1xf32>
    tpu.vector_store %arg7[%c0_15, %c0_16, %c0_17], %33 {strides = array<i32>} : memref<1x1x1xf32, #tpu.memory_space<vmem>>, vector<1x1x1xf32>,
    return
  }
  func.func @transform_0(%arg0: i32) -> (i32, i32) {
    %c0_i32 = arith.constant 0 : i32
    %c0_i32_0 = arith.constant 0 : i32
    return %arg0, %c0_i32 : i32, i32
  }
  func.func @transform_1(%arg0: i32) -> (i32, i32) {
    %c0_i32 = arith.constant 0 : i32
    %c0_i32_0 = arith.constant 0 : i32
    return %arg0, %c0_i32 : i32, i32
  }
  func.func @transform_2(%arg0: i32) -> (i32, i32) {
    %c0_i32 = arith.constant 0 : i32
    %c0_i32_0 = arith.constant 0 : i32
    return %c0_i32, %arg0 : i32, i32
  }
  func.func @transform_3(%arg0: i32) -> (i32, i32) {
    %c0_i32 = arith.constant 0 : i32
    %c0_i32_0 = arith.constant 0 : i32
    %c0_i32_1 = arith.constant 0 : i32
    return %c0_i32, %c0_i32_0 : i32, i32
  }
  func.func @transform_4(%arg0: i32) -> (i32, i32) {
    %c0_i32 = arith.constant 0 : i32
    %c0_i32_0 = arith.constant 0 : i32
    %c0_i32_1 = arith.constant 0 : i32
    return %c0_i32, %c0_i32_0 : i32, i32
  }
  func.func @transform_5(%arg0: i32) -> (i32, i32) {
    %c0_i32 = arith.constant 0 : i32
    %c0_i32_0 = arith.constant 0 : i32
    return %c0_i32, %arg0 : i32, i32
  }
  func.func @transform_6(%arg0: i32) -> (i32, i32, i32) {
    %c0_i32 = arith.constant 0 : i32
    %c0_i32_0 = arith.constant 0 : i32
    %c0_i32_1 = arith.constant 0 : i32
    return %arg0, %c0_i32, %c0_i32_0 : i32, i32, i32
  }
}

</mosaic_0001>

<bundles_post_ra>
// kernel: tpu_custom_call.1
= control target key start
LH: loop header
LB: loop body
LE: loop exit
PB: predicated region body
PF: predicated region fallthrough
CT: control target
= control target key end

     0   :  { %12 = vsyncpa [#allocation3], 0  ;;  %v4507_v2 = vmov 0   ;;  %s5986_s0 = inlined_call_operand.vmem [shape: s32[128,1], index: 0, kind: input, shape index: {}]   ;;  %s5987_s1 = inlined_call_operand.vmem [shape: s32[128,1], index: 1, kind: input, shape index: {}]   ;;  %s5988_s2 = inlined_call_operand.vmem [shape: f32[1,128], index: 2, kind: input, shape index: {}]   ;;  %s5989_s3 = inlined_call_operand.vmem [shape: f32[64,32], index: 3, kind: input, shape index: {}]   ;;  %s5990_s4 = inlined_call_operand.vmem [shape: f32[64,32], index: 4, kind: input, shape index: {}]   ;;  %s5991_s5 = inlined_call_operand.hbm [shape: f32[1,128], index: 5, kind: output, shape index: {0}]   ;;  %s5992_s6 = inlined_call_operand.hbm [shape: f32[1,1,1], index: 6, kind: output, shape index: {1}]  }
   0x1   :  { %v25_v0 = vld [vmem:[%s5986_s0 + $0x8] sm:$0xff]  ;;  %v24_v1 = vld [vmem:[%s5986_s0] sm:$0xff]  ;;  %4458 = vset.pattern.permute.xlu1 %v4507_v2  ;;  %4457 = vset.pattern.permute.xlu0 %v4507_v2  ;;  %v42_v5 = vld [vmem:[%s5987_s1 + $0x10] sm:$0xff] }
   0x2   :  { %62 = vperm.xlu1 %4458, %v25_v0   ;;  %59 = vperm.xlu0 %4457, %v24_v1   ;;  %v41_v3 = vld [vmem:[%s5987_s1 + $0x8] sm:$0xff]  ;;  %v40_v4 = vld [vmem:[%s5987_s1] sm:$0xff]  ;;  %v26_v6 = vld [vmem:[%s5986_s0 + $0x10] sm:$0xff] }
   0x3   :  { %v43_v7 = vld [vmem:[%s5987_s1 + $0x18] sm:$0xff]  ;;  %v4573_v9 = vld [vmem:[%s5989_s3] sm:$0xff]  ;;  %v4578_v10 = vld [vmem:[%s5989_s3 + $0x8] sm:$0xff] }
   0x4   :  { %v27_v8 = vld [vmem:[%s5986_s0 + $0x18] sm:$0xff]  ;;  %v308_v11 = vand.u32 4294901760, %v4573_v9  ;;  %v4584_v12 = vld [vmem:[%s5989_s3 + $0x10] sm:$0xff]  ;;  %v311_v14 = vand.u32 4294901760, %v4578_v10  ;;  %v4597_v17 = vld [vmem:[%s5990_s4] sm:$0xff] }
   0x5   :  { %v4589_v13 = vld [vmem:[%s5989_s3 + $0x18] sm:$0xff]  ;;  %v314_v15 = vand.u32 4294901760, %v4584_v12  ;;  %v4602_v18 = vld [vmem:[%s5990_s4 + $0x8] sm:$0xff]  ;;  %v4607_v19 = vld [vmem:[%s5989_s3 + $0x20] sm:$0xff]  ;;  %v1546_v20 = vand.u32 4294901760, %v4597_v17 }
   0x6   :  { %158 = vperm.xlu1 %4458, %v41_v3   ;;  %155 = vperm.xlu0 %4457, %v40_v4   ;;  %v317_v16 = vand.u32 4294901760, %v4589_v13  ;;  %v1549_v21 = vand.u32 4294901760, %v4602_v18  ;;  %v4614_v22 = vld [vmem:[%s5989_s3 + $0x28] sm:$0xff]  ;;  %v4619_v23 = vld [vmem:[%s5990_s4 + $0x10] sm:$0xff]  ;;  %v4624_v24 = vld [vmem:[%s5990_s4 + $0x18] sm:$0xff]  ;;  %v4630_v25 = vpack.c.bf16 %v311_v14, %v308_v11  ;;  %v320_v26 = vand.u32 4294901760, %v4607_v19 }
   0x7   :  { %v1552_v27 = vand.u32 4294901760, %v4619_v23  ;;  %v4637_v28 = vld [vmem:[%s5990_s4 + $0x20] sm:$0xff]  ;;  %v323_v33 = vand.u32 4294901760, %v4614_v22  ;;  %v1555_v34 = vand.u32 4294901760, %v4624_v24  ;;  %v4662_v35 = vld [vmem:[%s5990_s4 + $0x28] sm:$0xff]  ;;  %v4668_v36 = vld [vmem:[%s5989_s3 + $0x30] sm:$0xff] }
   0x8   :  { %v44_v29 = vld [vmem:[%s5987_s1 + $0x20] sm:$0xff]  ;;  %v4649_v31 = vpack.c.bf16 %v317_v16, %v314_v15  ;;  %v4655_v32 = vpack.c.bf16 %v1549_v21, %v1546_v20  ;;  %4102 = vmatprep.subr.bf16.mxu0 %v4630_v25  ;;  %v4673_v37 = vld [vmem:[%s5989_s3 + $0x38] sm:$0xff]  ;;  %v1558_v38 = vand.u32 4294901760, %v4637_v28  ;;  %v1561_v39 = vand.u32 4294901760, %v4662_v35 }
   0x9   :  { %v28_v30 = vld [vmem:[%s5986_s0 + $0x20] sm:$0xff] }
   0xa   :  { %161 = vperm.xlu1 %4458, %v42_v5   ;;  %65 = vperm.xlu0 %4457, %v26_v6   ;;  %6159 = vst [vmem:[#allocation8_spill] sm:$0xff] %v4649_v31 }
   0xe   :  { %164 = vperm.xlu1 %4458, %v43_v7   ;;  %68 = vperm.xlu0 %4457, %v27_v8  }
   0xf   :  { %13 = vsyncpa [#allocation5], 0  ;;  %4104 = vmatpush3.bf16.msra.mxu0 %v4630_v25  ;;  %4198 = vmatprep.subr.bf16.mxu1 %v4655_v32  ;;  %v4683_v40 = vpack.c.bf16 %v1555_v34, %v1552_v27  ;;  %v4688_v41 = vld [vmem:[%s5990_s4 + $0x30] sm:$0xff]  ;;  %v4693_v42 = vld [vmem:[%s5990_s4 + $0x38] sm:$0xff]  ;;  %v4707_v45 = vpack.c.bf16 %v323_v33, %v320_v26  ;;  %v326_v46 = vand.u32 4294901760, %v4668_v36  ;;  %v329_v47 = vand.u32 4294901760, %v4673_v37 }
  0x10   :  { %v45_v43 = vld [vmem:[%s5987_s1 + $0x28] sm:$0xff]  ;;  %4106 = vmatprep.subr.bf16.mxu0 %v4649_v31  ;;  %4200 = vmatpush3.bf16.msra.mxu1 %v4655_v32  ;;  %v4716_v48 = vpack.c.bf16 %v1561_v39, %v1558_v38  ;;  %v1564_v49 = vand.u32 4294901760, %v4688_v41  ;;  %v1567_v50 = vand.u32 4294901760, %v4693_v42  ;;  %v46_v51 = vld [vmem:[%s5987_s1 + $0x30] sm:$0xff]  ;;  %v47_v55 = vld [vmem:[%s5987_s1 + $0x38] sm:$0xff]  ;;  %v4781_v1 = vsub.f32 %v4573_v9, %v308_v11 }
  0x11   :  { %6160 = vst [vmem:[#allocation9_spill] sm:$0xff] %v4683_v40  ;;  %v29_v44 = vld [vmem:[%s5986_s0 + $0x28] sm:$0xff]  ;;  %6161 = vst [vmem:[#allocation10_spill] sm:$0xff] %v4707_v45  ;;  %4202 = vmatprep.subr.bf16.mxu1 %v4683_v40  ;;  %v30_v52 = vld [vmem:[%s5986_s0 + $0x30] sm:$0xff]  ;;  %v4733_v53 = vpack.c.bf16 %v329_v47, %v326_v46  ;;  %v4786_v2 = vsub.f32 %v4578_v10, %v311_v14  ;;  %v4791_v3 = vsub.f32 %v4597_v17, %v1546_v20  ;;  %vm258_vm0 = vcmask 523264  }
  0x12   :  { %167 = vperm.xlu1 %4458, %v44_v29   ;;  %71 = vperm.xlu0 %4457, %v28_v30   ;;  %6162 = vst [vmem:[#allocation11_spill] sm:$0xff] %v4716_v48  ;;  %v4740_v54 = vpack.c.bf16 %v1567_v50, %v1564_v49  ;;  %v31_v56 = vld [vmem:[%s5986_s0 + $0x38] sm:$0xff]  ;;  %v48_v57 = vld [vmem:[%s5987_s1 + $0x40] sm:$0xff]  ;;  %v49_v59 = vld [vmem:[%s5987_s1 + $0x48] sm:$0xff]  ;;  %v4796_v4 = vsub.f32 %v4602_v18, %v1549_v21  ;;  %v6011_v7 = vand.u32 4294901760, %v4781_v1 }
  0x13   :  { %4108 = vmatpush3.bf16.msra.mxu0 %v4649_v31  ;;  %6163 = vst [vmem:[#allocation12_spill] sm:$0xff] %v4733_v53  ;;  %v32_v58 = vld [vmem:[%s5986_s0 + $0x40] sm:$0xff]  ;;  %v33_v60 = vld [vmem:[%s5986_s0 + $0x48] sm:$0xff]  ;;  %v50_v61 = vld [vmem:[%s5987_s1 + $0x50] sm:$0xff]  ;;  %v6010_v8 = vand.u32 4294901760, %v4786_v2  ;;  %v6009_v9 = vand.u32 4294901760, %v4791_v3 }
  0x14   :  { %4110 = vmatprep.subr.bf16.mxu0 %v4707_v45  ;;  %4204 = vmatpush3.bf16.msra.mxu1 %v4683_v40  ;;  %6164 = vst [vmem:[#allocation13_spill] sm:$0xff] %v4740_v54  ;;  %v34_v62 = vld [vmem:[%s5986_s0 + $0x50] sm:$0xff]  ;;  %v51_v63 = vld [vmem:[%s5987_s1 + $0x58] sm:$0xff]  ;;  %6165 = vst [vmem:[#allocation14_spill] sm:$0xff] %v4781_v1  ;;  %v6006_v10 = vand.u32 4294901760, %v4796_v4  ;;  %v544_v11 = vsub.f32 %v4781_v1, %v6011_v7 }
  0x15   :  { %4206 = vmatprep.subr.bf16.mxu1 %v4716_v48  ;;  %v35_v0 = vld [vmem:[%s5986_s0 + $0x58] sm:$0xff]  ;;  %6166 = vst [vmem:[#allocation15_spill] sm:$0xff] %v4786_v2  ;;  %6167 = vst [vmem:[#allocation16_spill] sm:$0xff] %v4791_v3  ;;  %v52_v5 = vld [vmem:[%s5987_s1 + $0x60] sm:$0xff]  ;;  %v551_v14 = vsub.f32 %v4786_v2, %v6010_v8  ;;  %v1782_v17 = vsub.f32 %v4791_v3, %v6009_v9 }
  0x16   :  { %170 = vperm.xlu1 %4458, %v45_v43   ;;  %74 = vperm.xlu0 %4457, %v29_v44   ;;  %6168 = vst [vmem:[#allocation17_spill] sm:$0xff] %v4796_v4  ;;  %v36_v6 = vld [vmem:[%s5986_s0 + $0x60] sm:$0xff]  ;;  %v1789_v18 = vsub.f32 %v4796_v4, %v6006_v10  ;;  %v53_v20 = vld [vmem:[%s5987_s1 + $0x68] sm:$0xff]  ;;  %v545_v29 = vand.u32 4294901760, %v544_v11  ;;  %v4883_v11 = vsub.f32 %v4607_v19, %v320_v26 }
  0x17   :  { %4112 = vmatpush3.bf16.msra.mxu0 %v4707_v45  ;;  %v37_v21 = vld [vmem:[%s5986_s0 + $0x68] sm:$0xff]  ;;  %v552_v30 = vand.u32 4294901760, %v551_v14  ;;  %v1783_v43 = vand.u32 4294901760, %v1782_v17  ;;  %v4888_v14 = vsub.f32 %v4614_v22, %v323_v33 }
  0x18   :  { %4114 = vmatprep.subr.bf16.mxu0 %v4733_v53  ;;  %4208 = vmatpush3.bf16.msra.mxu1 %v4716_v48  ;;  %v1790_v44 = vand.u32 4294901760, %v1789_v18  ;;  %6173 = vst [vmem:[#allocation22_spill] sm:$0xff] %v4883_v11  ;;  %v4895_v18 = vsub.f32 %v4637_v28, %v1558_v38  ;;  %v6001_v26 = vand.u32 4294901760, %v4883_v11  ;;  %v4917_v38 = vsub.f32 %v4668_v36, %v326_v46 }
  0x19   :  { %4210 = vmatprep.subr.bf16.mxu1 %v4740_v54  ;;  %6174 = vst [vmem:[#allocation23_spill] sm:$0xff] %v4888_v14  ;;  %v6000_v22 = vand.u32 4294901760, %v4888_v14  ;;  %v4938_v36 = vsub.f32 %v4693_v42, %v1567_v50 }
  0x1a   :  { %173 = vperm.xlu1 %4458, %v46_v51   ;;  %77 = vperm.xlu0 %4457, %v30_v52   ;;  %v4826_v51 = vpack.c.bf16 %v552_v30, %v545_v29  ;;  %v4828_v52 = vpack.c.bf16 %v1790_v44, %v1783_v43  ;;  %6175 = vst [vmem:[#allocation24_spill] sm:$0xff] %v4895_v18  ;;  %v5999_v33 = vand.u32 4294901760, %v4895_v18  ;;  %6177 = vst [vmem:[#allocation26_spill] sm:$0xff] %v4917_v38 }
  0x1b   :  { %4116 = vmatpush3.bf16.msra.mxu0 %v4733_v53  ;;  %v572_v28 = vsub.f32 %v4883_v11, %v6001_v26  ;;  %v4933_v43 = vsub.f32 %v4688_v41, %v1564_v49  ;;  %6180 = vst [vmem:[#allocation29_spill] sm:$0xff] %v4938_v36 }
  0x1c   :  { %4212 = vmatpush3.bf16.msra.mxu1 %v4740_v54  ;;  %4118 = vmatprep.subr.bf16.mxu0 %v4826_v51  ;;  %v1810_v29 = vsub.f32 %v4895_v18, %v5999_v33 }
  0x1d   :  { %4214 = vmatprep.subr.bf16.mxu1 %v4828_v52  ;;  %6179 = vst [vmem:[#allocation28_spill] sm:$0xff] %v4933_v43 }
  0x1e   :  { %176 = vperm.xlu1 %4458, %v47_v55   ;;  %80 = vperm.xlu0 %4457, %v31_v56   ;;  %v4833_v55 = vsub.f32 %v4584_v12, %v314_v15  ;;  %v4838_v56 = vsub.f32 %v4589_v13, %v317_v16  ;;  %v54_v12 = vld [vmem:[%s5987_s1 + $0x70] sm:$0xff] }
  0x1f   :  { %v38_v13 = vld [vmem:[%s5986_s0 + $0x70] sm:$0xff] }
  0x20   :  { %6169 = vst [vmem:[#allocation18_spill] sm:$0xff] %v4833_v55  ;;  %6170 = vst [vmem:[#allocation19_spill] sm:$0xff] %v4838_v56  ;;  %v6005_v15 = vand.u32 4294901760, %v4833_v55  ;;  %v6004_v16 = vand.u32 4294901760, %v4838_v56 }
  0x22   :  { %179 = vperm.xlu1 %4458, %v48_v57   ;;  %83 = vperm.xlu0 %4457, %v32_v58   ;;  %v4843_v57 = vsub.f32 %v4619_v23, %v1552_v27  ;;  %v4848_v58 = vsub.f32 %v4624_v24, %v1555_v34  ;;  %v558_v27 = vsub.f32 %v4833_v55, %v6005_v15 }
  0x23   :  { %v565_v34 = vsub.f32 %v4838_v56, %v6004_v16 }
  0x24   :  { %6171 = vst [vmem:[#allocation20_spill] sm:$0xff] %v4843_v57  ;;  %6172 = vst [vmem:[#allocation21_spill] sm:$0xff] %v4848_v58  ;;  %v6003_v23 = vand.u32 4294901760, %v4843_v57  ;;  %v6002_v24 = vand.u32 4294901760, %v4848_v58 }
  0x26   :  { %182 = vperm.xlu1 %4458, %v49_v59   ;;  %86 = vperm.xlu0 %4457, %v33_v60   ;;  %v1796_v59 = vsub.f32 %v4843_v57, %v6003_v23  ;;  %v1803_v60 = vsub.f32 %v4848_v58, %v6002_v24 }
  0x2a   :  { %185 = vperm.xlu1 %4458, %v50_v61   ;;  %89 = vperm.xlu0 %4457, %v34_v62   ;;  %v55_v61 = vld [vmem:[%s5987_s1 + $0x78] sm:$0xff] }
  0x2b   :  { %v39_v62 = vld [vmem:[%s5986_s0 + $0x78] sm:$0xff] }
  0x2e   :  { %188 = vperm.xlu1 %4458, %v51_v63   ;;  %92 = vperm.xlu0 %4457, %v35_v0   ;;  %v559_v63 = vand.u32 4294901760, %v558_v27  ;;  %v566_v0 = vand.u32 4294901760, %v565_v34  ;;  %v5995_v27 = vand.u32 4294901760, %v4933_v43  ;;  %v5994_v34 = vand.u32 4294901760, %v4938_v36 }
  0x30   :  { %v4890_v17 = vpack.c.bf16 %v566_v0, %v559_v63  ;;  %v1824_v50 = vsub.f32 %v4933_v43, %v5995_v27 }
  0x32   :  { %191 = vperm.xlu1 %4458, %v52_v5   ;;  %95 = vperm.xlu0 %4457, %v36_v6   ;;  %v1797_v5 = vand.u32 4294901760, %v1796_v59  ;;  %v1804_v6 = vand.u32 4294901760, %v1803_v60  ;;  %v1831_v60 = vsub.f32 %v4938_v36, %v5994_v34  ;;  %v1825_v63 = vand.u32 4294901760, %v1824_v50 }
  0x34   :  { %v4902_v19 = vpack.c.bf16 %v1804_v6, %v1797_v5  ;;  %v1832_v0 = vand.u32 4294901760, %v1831_v60 }
  0x36   :  { %194 = vperm.xlu1 %4458, %v53_v20   ;;  %98 = vperm.xlu0 %4457, %v37_v21   ;;  %v4900_v20 = vsub.f32 %v4662_v35, %v1561_v39  ;;  %v579_v35 = vsub.f32 %v4888_v14, %v6000_v22  ;;  %v4922_v39 = vsub.f32 %v4673_v37, %v329_v47  ;;  %v573_v37 = vand.u32 4294901760, %v572_v28 }
  0x37   :  { %v5997_v47 = vand.u32 4294901760, %v4917_v38  ;;  %v4962_v6 = vpack.c.bf16 %v1832_v0, %v1825_v63  ;;  %v4966_v28 = vpack.c.bf16 %v4786_v2, %v4781_v1 }
  0x38   :  { %6176 = vst [vmem:[#allocation25_spill] sm:$0xff] %v4900_v20  ;;  %v5998_v21 = vand.u32 4294901760, %v4900_v20  ;;  %6178 = vst [vmem:[#allocation27_spill] sm:$0xff] %v4922_v39  ;;  %v580_v46 = vand.u32 4294901760, %v579_v35  ;;  %v5996_v44 = vand.u32 4294901760, %v4922_v39  ;;  %v4970_v35 = vpack.c.bf16 %v4796_v4, %v4791_v3 }
  0x39   :  { %v586_v41 = vsub.f32 %v4917_v38, %v5997_v47 }
  0x3a   :  { %197 = vperm.xlu1 %4458, %v54_v12   ;;  %101 = vperm.xlu0 %4457, %v38_v13   ;;  %v1817_v30 = vsub.f32 %v4900_v20, %v5998_v21  ;;  %v1811_v12 = vand.u32 4294901760, %v1810_v29  ;;  %v4944_v59 = vpack.c.bf16 %v580_v46, %v573_v37  ;;  %v593_v42 = vsub.f32 %v4922_v39, %v5996_v44 }
  0x3b   :  { %v4974_v29 = vpack.c.bf16 %v4838_v56, %v4833_v55  ;;  %v4982_v37 = vpack.c.bf16 %v4888_v14, %v4883_v11  ;;  %v4986_v46 = vpack.c.bf16 %v4900_v20, %v4895_v18 }
  0x3c   :  { %v1818_v13 = vand.u32 4294901760, %v1817_v30  ;;  %v4978_v30 = vpack.c.bf16 %v4848_v58, %v4843_v57 }
  0x3e   :  { %200 = vperm.xlu1 %4458, %v55_v61   ;;  %104 = vperm.xlu0 %4457, %v39_v62   ;;  %v4952_v49 = vpack.c.bf16 %v1818_v13, %v1811_v12  ;;  %v587_v61 = vand.u32 4294901760, %v586_v41  ;;  %v594_v62 = vand.u32 4294901760, %v593_v42  ;;  %v4990_v12 = vpack.c.bf16 %v4922_v39, %v4917_v38 }
  0x3f   :  { %v4994_v13 = vpack.c.bf16 %v4938_v36, %v4933_v43  ;;  %v5993_v41 = vlaneseq }
  0x40   :  { %v4960_v5 = vpack.c.bf16 %v594_v62, %v587_v61  ;;  %v6015_v61 = vmov 0.0  }
  0x41   :  { %v4997_v42 = vand.u32 127, %v5993_v41 }
  0x43   :  { %6181 = vst [vmem:[#allocation30_spill] sm:$0xff] %v4997_v42 }
  0x81   :  { %v63_v50 = vpop.permute.xlu1 %62  ;;  %v60_v60 = vpop.permute.xlu0 %59 }
  0x82   :  { %vm107_vm1 = vcmp.eq.s32.totalorder %v4997_v42, %v63_v50  ;;  %vm106_vm2 = vcmp.eq.s32.totalorder %v4997_v42, %v60_v60 }
  0x83   :  { %v5002_v62 = vsel %vm107_vm1, 1.0, %v6015_v61  ;;  %v5005_v63 = vsel %vm106_vm2, 1.0, %v6015_v61 }
  0x84   :  { %v263_v0 = vsel %vm258_vm0, %v5002_v62, 0  ;;  %v260_v41 = vsel %vm258_vm0, %v5005_v63, 0 }
  0x85   :  { %v5011_v34 = vsub.f32 %v263_v0, %v263_v0  ;;  %v159_v27 = vpop.permute.xlu1 %158  ;;  %v156_v44 = vpop.permute.xlu0 %155  ;;  %v5013_v50 = vsub.f32 %v260_v41, %v260_v41 }
  0x86   :  { %vm203_vm3 = vcmp.eq.s32.totalorder %v4997_v42, %v159_v27  ;;  %vm202_vm4 = vcmp.eq.s32.totalorder %v4997_v42, %v156_v44 }
  0x87   :  { %v5018_v60 = vsel %vm203_vm3, 1.0, %v6015_v61  ;;  %v5021_v47 = vsel %vm202_vm4, 1.0, %v6015_v61  ;;  %v6007_v21 = vand.u32 4294901760, %v5013_v50  ;;  %v6008_v33 = vand.u32 4294901760, %v5011_v34 }
  0x88   :  { %v1501_v0 = vsel %vm258_vm0, %v5018_v60, 0  ;;  %v1498_v41 = vsel %vm258_vm0, %v5021_v47, 0 }
  0x89   :  { %v5029_v22 = vsub.f32 %v1501_v0, %v1501_v0  ;;  %v162_v27 = vpop.permute.xlu1 %161  ;;  %v66_v44 = vpop.permute.xlu0 %65  ;;  %v383_v26 = vsub.f32 %v5013_v50, %v6007_v21  ;;  %v393_v24 = vsub.f32 %v5011_v34, %v6008_v33  ;;  %v5037_v23 = vsub.f32 %v1498_v41, %v1498_v41 }
  0x8a   :  { %vm204_vm5 = vcmp.eq.s32.totalorder %v4997_v42, %v162_v27  ;;  %vm108_vm6 = vcmp.eq.s32.totalorder %v4997_v42, %v66_v44 }
  0x8b   :  { %v5042_v16 = vsel %vm204_vm5, 1.0, %v6015_v61  ;;  %v5045_v0 = vsel %vm108_vm6, 1.0, %v6015_v61  ;;  %v384_v15 = vand.u32 4294901760, %v383_v26  ;;  %v394_v10 = vand.u32 4294901760, %v393_v24 }
  0x8c   :  { %v1504_v21 = vsel %vm258_vm0, %v5042_v16, 0  ;;  %v266_v33 = vsel %vm258_vm0, %v5045_v0, 0  ;;  %v6012_v41 = vand.u32 4294901760, %v5037_v23  ;;  %v6013_v27 = vand.u32 4294901760, %v5029_v22 }
  0x8d   :  { %v5053_v9 = vsub.f32 %v1504_v21, %v1504_v21  ;;  %v5055_v44 = vsub.f32 %v266_v33, %v266_v33  ;;  %v165_v8 = vpop.permute.xlu1 %164  ;;  %3637 = vmatprep.mubr.f32.mxu0 %v384_v15  ;;  %v69_v7 = vpop.permute.xlu0 %68 }
  0x8e   :  { %vm205_vm7 = vcmp.eq.s32.totalorder %v4997_v42, %v165_v8  ;;  %vm109_vm8 = vcmp.eq.s32.totalorder %v4997_v42, %v69_v7  ;;  %3638 = vmatmul.mubr.f32.vlgmr.msra.gmra.mrb[0].mxu0 %v394_v10  ;;  %v1621_v24 = vsub.f32 %v5037_v23, %v6012_v41  ;;  %v1631_v26 = vsub.f32 %v5029_v22, %v6013_v27 }
  0x8f   :  { %6182 = vst [vmem:[#allocation31_spill] sm:$0xff] %v5053_v9  ;;  %v5066_v21 = vsel %vm205_vm7, 1.0, %v6015_v61  ;;  %v5069_v33 = vsel %vm109_vm8, 1.0, %v6015_v61  ;;  %4120 = vmatpush3.bf16.msra.mxu0 %v4826_v51  ;;  %v6185_v8 = vand.u32 4294901760, %v5055_v44  ;;  %v6186_v39 = vand.u32 4294901760, %v5053_v9 }
  0x90   :  { %v1507_v7 = vsel %vm258_vm0, %v5066_v21, 0  ;;  %v269_v10 = vsel %vm258_vm0, %v5069_v33, 0  ;;  %v1622_v41 = vand.u32 4294901760, %v1621_v24  ;;  %v1632_v27 = vand.u32 4294901760, %v1631_v26  ;;  %4122 = vmatprep.subr.bf16.mxu0 %v4890_v17 }
  0x91   :  { %v5079_v36 = vsub.f32 %v1507_v7, %v1507_v7  ;;  %v5081_v61 = vsub.f32 %v269_v10, %v269_v10  ;;  %v168_v43 = vpop.permute.xlu1 %167  ;;  %v72_v15 = vpop.permute.xlu0 %71  ;;  %v403_v51 = vsub.f32 %v5055_v44, %v6185_v8  ;;  %v1641_v38 = vsub.f32 %v5053_v9, %v6186_v39 }
  0x92   :  { %vm206_vm9 = vcmp.eq.s32.totalorder %v4997_v42, %v168_v43  ;;  %3877 = vmatprep.mubr.f32.mxu1 %v1622_v41  ;;  %vm110_vm10 = vcmp.eq.s32.totalorder %v4997_v42, %v72_v15  ;;  %v6187_v24 = vmov 0.0  }
  0x93   :  { %6183 = vst [vmem:[#allocation32_spill] sm:$0xff] %v5079_v36  ;;  %6184 = vst [vmem:[#allocation33_spill] sm:$0xff] %v5081_v61  ;;  %v5092_v26 = vsel %vm206_vm9, 1.0, %v6187_v24  ;;  %v5095_v7 = vsel %vm110_vm10, 1.0, %v6187_v24  ;;  %3878 = vmatmul.mubr.f32.vlgmr.msra.gmra.mrb[0].mxu1 %v1632_v27  ;;  %v404_v10 = vand.u32 4294901760, %v403_v51  ;;  %v1642_v20 = vand.u32 4294901760, %v1641_v38  ;;  %4124 = vmatpush3.bf16.msra.mxu0 %v4890_v17 }
  0x94   :  { %v1510_v8 = vsel %vm258_vm0, %v5092_v26, 0  ;;  %v272_v39 = vsel %vm258_vm0, %v5095_v7, 0  ;;  %v6022_v43 = vand.u32 4294901760, %v5081_v61  ;;  %v6021_v41 = vand.u32 4294901760, %v5079_v36  ;;  %4216 = vmatpush3.bf16.msra.mxu1 %v4828_v52  ;;  %4126 = vmatprep.subr.bf16.mxu0 %v4944_v59 }
  0x95   :  { %v5106_v15 = vsub.f32 %v1510_v8, %v1510_v8  ;;  %v5108_v27 = vsub.f32 %v272_v39, %v272_v39  ;;  %v171_v38 = vpop.permute.xlu1 %170  ;;  %3640 = vmatprep.mubr.f32.mxu0 %v404_v10  ;;  %3880 = vmatprep.mubr.f32.mxu1 %v1642_v20  ;;  %v75_v17 = vpop.permute.xlu0 %74 }
  0x96   :  { %vm207_vm11 = vcmp.eq.s32.totalorder %v4997_v42, %v171_v38  ;;  %vm111_vm12 = vcmp.eq.s32.totalorder %v4997_v42, %v75_v17  ;;  %v413_v51 = vsub.f32 %v5081_v61, %v6022_v43  ;;  %v1651_v52 = vsub.f32 %v5079_v36, %v6021_v41  ;;  %4218 = vmatprep.subr.bf16.mxu1 %v4902_v19 }
  0x97   :  { %6188 = vst [vmem:[#allocation34_spill] sm:$0xff] %v5106_v15  ;;  %6189 = vst [vmem:[#allocation35_spill] sm:$0xff] %v5108_v27  ;;  %v5120_v8 = vsel %vm207_vm11, 1.0, %v6187_v24  ;;  %v5123_v20 = vsel %vm111_vm12, 1.0, %v6187_v24  ;;  %4128 = vmatpush3.bf16.msra.mxu0 %v4944_v59  ;;  %v6193_v59 = vand.u32 4294901760, %v5108_v27  ;;  %v6194_v58 = vand.u32 4294901760, %v5106_v15 }
  0x98   :  { %6190 = vst [vmem:[#allocation36_spill] sm:$0xff] %v5120_v8  ;;  %v1513_v38 = vsel %vm258_vm0, %v5120_v8, 0  ;;  %v275_v17 = vsel %vm258_vm0, %v5123_v20, 0  ;;  %v414_v41 = vand.u32 4294901760, %v413_v51  ;;  %v1652_v43 = vand.u32 4294901760, %v1651_v52  ;;  %4220 = vmatpush3.bf16.msra.mxu1 %v4902_v19  ;;  %4130 = vmatprep.subr.bf16.mxu0 %v4960_v5 }
  0x99   :  { %v5134_v18 = vsub.f32 %v1513_v38, %v1513_v38  ;;  %v5136_v14 = vsub.f32 %v275_v17, %v275_v17  ;;  %v174_v10 = vpop.permute.xlu1 %173  ;;  %v78_v39 = vpop.permute.xlu0 %77  ;;  %v423_v11 = vsub.f32 %v5108_v27, %v6193_v59  ;;  %v1661_v57 = vsub.f32 %v5106_v15, %v6194_v58  ;;  %4222 = vmatprep.subr.bf16.mxu1 %v4952_v49 }
  0x9a   :  { %vm208_vm13 = vcmp.eq.s32.totalorder %v4997_v42, %v174_v10  ;;  %3641 = vmatmul.mubr.f32.gmra.mrb[2].mxu0 %v414_v41  ;;  %3881 = vmatmul.mubr.f32.gmra.mrb[2].mxu1 %v1652_v43  ;;  %vm112_vm14 = vcmp.eq.s32.totalorder %v4997_v42, %v78_v39 }
  0x9b   :  { %6191 = vst [vmem:[#allocation37_spill] sm:$0xff] %v5134_v18  ;;  %6192 = vst [vmem:[#allocation38_spill] sm:$0xff] %v5136_v14  ;;  %v5148_v19 = vsel %vm208_vm13, 1.0, %v6187_v24  ;;  %v5151_v51 = vsel %vm112_vm14, 1.0, %v6187_v24  ;;  %v424_v52 = vand.u32 4294901760, %v423_v11  ;;  %v1662_v38 = vand.u32 4294901760, %v1661_v57  ;;  %4132 = vmatpush3.bf16.msra.mxu0 %v4960_v5 }
  0x9c   :  { %6195 = vst [vmem:[#allocation39_spill] sm:$0xff] %v5148_v19  ;;  %6196 = vst [vmem:[#allocation40_spill] sm:$0xff] %v5151_v51  ;;  %v1516_v58 = vsel %vm258_vm0, %v5148_v19, 0  ;;  %v278_v10 = vsel %vm258_vm0, %v5151_v51, 0  ;;  %v6029_v43 = vand.u32 4294901760, %v5136_v14  ;;  %v6028_v41 = vand.u32 4294901760, %v5134_v18  ;;  %4224 = vmatpush3.bf16.msra.mxu1 %v4952_v49  ;;  %4134 = vmatprep.subr.bf16.mxu0 %v4966_v28 }
  0x9d   :  { %v5162_v39 = vsub.f32 %v1516_v58, %v1516_v58  ;;  %v5164_v11 = vsub.f32 %v278_v10, %v278_v10  ;;  %v177_v57 = vpop.permute.xlu1 %176  ;;  %3643 = vmatprep.mubr.f32.mxu0 %v424_v52  ;;  %3883 = vmatprep.mubr.f32.mxu1 %v1662_v38  ;;  %v81_v5 = vpop.permute.xlu0 %80 }
  0x9e   :  { %vm209_vm15 = vcmp.eq.s32.totalorder %v4997_v42, %v177_v57  ;;  %vm113_vm1 = vcmp.eq.s32.totalorder %v4997_v42, %v81_v5  ;;  %v433_v17 = vsub.f32 %v5136_v14, %v6029_v43  ;;  %v1671_v49 = vsub.f32 %v5134_v18, %v6028_v41  ;;  %4226 = vmatprep.subr.bf16.mxu1 %v4962_v6 }
  0x9f   :  { %6197 = vst [vmem:[#allocation41_spill] sm:$0xff] %v5162_v39  ;;  %6198 = vst [vmem:[#allocation42_spill] sm:$0xff] %v5164_v11  ;;  %v5176_v59 = vsel %vm209_vm15, 1.0, %v6187_v24  ;;  %v5179_v52 = vsel %vm113_vm1, 1.0, %v6187_v24  ;;  %v6035_v38 = vand.u32 4294901760, %v5164_v11  ;;  %v6203_v3 = vand.u32 4294901760, %v5162_v39 }
  0xa0   :  { %6199 = vst [vmem:[#allocation43_spill] sm:$0xff] %v5176_v59  ;;  %6200 = vst [vmem:[#allocation44_spill] sm:$0xff] %v5179_v52  ;;  %v1519_v10 = vsel %vm258_vm0, %v5176_v59, 0  ;;  %v281_v57 = vsel %vm258_vm0, %v5179_v52, 0  ;;  %v434_v5 = vand.u32 4294901760, %v433_v17  ;;  %v1672_v41 = vand.u32 4294901760, %v1671_v49  ;;  %4228 = vmatpush3.bf16.msra.mxu1 %v4962_v6 }
  0xa1   :  { %v5188_v43 = vsub.f32 %v1519_v10, %v1519_v10  ;;  %v5190_v56 = vsub.f32 %v281_v57, %v281_v57  ;;  %v180_v55 = vpop.permute.xlu1 %179  ;;  %v84_v4 = vpop.permute.xlu0 %83  ;;  %v443_v58 = vsub.f32 %v5164_v11, %v6035_v38  ;;  %v1681_v2 = vsub.f32 %v5162_v39, %v6203_v3  ;;  %4230 = vmatprep.subr.bf16.mxu1 %v4970_v35 }
  0xa2   :  { %vm210_vm2 = vcmp.eq.s32.totalorder %v4997_v42, %v180_v55  ;;  %3644 = vmatmul.mubr.f32.gmra.mrb[4].mxu0 %v434_v5  ;;  %3884 = vmatmul.mubr.f32.gmra.mrb[4].mxu1 %v1672_v41  ;;  %vm114_vm3 = vcmp.eq.s32.totalorder %v4997_v42, %v84_v4 }
  0xa3   :  { %6201 = vst [vmem:[#allocation45_spill] sm:$0xff] %v5188_v43  ;;  %6202 = vst [vmem:[#allocation46_spill] sm:$0xff] %v5190_v56  ;;  %v5202_v6 = vsel %vm210_vm2, 1.0, %v6187_v24  ;;  %v5205_v17 = vsel %vm114_vm3, 1.0, %v6187_v24  ;;  %v444_v49 = vand.u32 4294901760, %v443_v58  ;;  %v1682_v10 = vand.u32 4294901760, %v1681_v2 }
  0xa4   :  { %6204 = vst [vmem:[#allocation47_spill] sm:$0xff] %v5202_v6  ;;  %6205 = vst [vmem:[#allocation48_spill] sm:$0xff] %v5205_v17  ;;  %v1522_v57 = vsel %vm258_vm0, %v5202_v6, 0  ;;  %v284_v3 = vsel %vm258_vm0, %v5205_v17, 0  ;;  %v6037_v55 = vand.u32 4294901760, %v5190_v56  ;;  %v6042_v41 = vand.u32 4294901760, %v5188_v43 }
  0xa5   :  { %v5213_v5 = vsub.f32 %v1522_v57, %v1522_v57  ;;  %v5215_v4 = vsub.f32 %v284_v3, %v284_v3  ;;  %v183_v38 = vpop.permute.xlu1 %182  ;;  %3646 = vmatprep.mubr.f32.mxu0 %v444_v49  ;;  %3886 = vmatprep.mubr.f32.mxu1 %v1682_v10  ;;  %v87_v1 = vpop.permute.xlu0 %86  ;;  %vm2743_vm3 = vcmask 261120  }
  0xa6   :  { %vm211_vm4 = vcmp.eq.s32.totalorder %v4997_v42, %v183_v38  ;;  %vm115_vm5 = vcmp.eq.s32.totalorder %v4997_v42, %v87_v1  ;;  %v453_v2 = vsub.f32 %v5190_v56, %v6037_v55  ;;  %v1691_v58 = vsub.f32 %v5188_v43, %v6042_v41 }
  0xa7   :  { %6206 = vst [vmem:[#allocation49_spill] sm:$0xff] %v5213_v5  ;;  %6207 = vst [vmem:[#allocation50_spill] sm:$0xff] %v5215_v4  ;;  %v5226_v57 = vsel %vm211_vm4, 1.0, %v6187_v24  ;;  %v5229_v3 = vsel %vm115_vm5, 1.0, %v6187_v24  ;;  %v6051_v49 = vand.u32 4294901760, %v5215_v4  ;;  %v6052_v38 = vand.u32 4294901760, %v5213_v5 }
  0xa8   :  { %6208 = vst [vmem:[#allocation51_spill] sm:$0xff] %v5226_v57  ;;  %6209 = vst [vmem:[#allocation52_spill] sm:$0xff] %v5229_v3  ;;  %v1525_v1 = vsel %vm258_vm0, %v5226_v57, 0  ;;  %v287_v10 = vsel %vm258_vm0, %v5229_v3, 0  ;;  %v454_v55 = vand.u32 4294901760, %v453_v2  ;;  %v1692_v56 = vand.u32 4294901760, %v1691_v58 }
  0xa9   :  { %v5237_v54 = vsub.f32 %v1525_v1, %v1525_v1  ;;  %v5239_v41 = vsub.f32 %v287_v10, %v287_v10  ;;  %v186_v43 = vpop.permute.xlu1 %185  ;;  %v90_v53 = vpop.permute.xlu0 %89  ;;  %v463_v39 = vsub.f32 %v5215_v4, %v6051_v49  ;;  %v1701_v11 = vsub.f32 %v5213_v5, %v6052_v38 }
  0xaa   :  { %vm212_vm6 = vcmp.eq.s32.totalorder %v4997_v42, %v186_v43  ;;  %3647 = vmatmul.mubr.f32.gmra.mrb[6].mxu0 %v454_v55  ;;  %3887 = vmatmul.mubr.f32.gmra.mrb[6].mxu1 %v1692_v56  ;;  %vm116_vm7 = vcmp.eq.s32.totalorder %v4997_v42, %v90_v53  ;;  %vm2824_vm4 = vcmask 195712   ;;  %vm2831_vm5 = vcmask 261312  }
  0xab   :  { %6210 = vst [vmem:[#allocation53_spill] sm:$0xff] %v5237_v54  ;;  %6211 = vst [vmem:[#allocation54_spill] sm:$0xff] %v5239_v41  ;;  %v5250_v2 = vsel %vm212_vm6, 1.0, %v6187_v24  ;;  %v5253_v58 = vsel %vm116_vm7, 1.0, %v6187_v24  ;;  %v464_v1 = vand.u32 4294901760, %v463_v39  ;;  %v1702_v10 = vand.u32 4294901760, %v1701_v11 }
  0xac   :  { %6212 = vst [vmem:[#allocation55_spill] sm:$0xff] %v5250_v2  ;;  %6213 = vst [vmem:[#allocation56_spill] sm:$0xff] %v5253_v58  ;;  %v1528_v49 = vsel %vm258_vm0, %v5250_v2, 0  ;;  %v290_v38 = vsel %vm258_vm0, %v5253_v58, 0  ;;  %v6057_v43 = vand.u32 4294901760, %v5239_v41  ;;  %v6062_v56 = vand.u32 4294901760, %v5237_v54 }
  0xad   :  { %v5261_v55 = vsub.f32 %v1528_v49, %v1528_v49  ;;  %v5263_v53 = vsub.f32 %v290_v38, %v290_v38  ;;  %v189_v5 = vpop.permute.xlu1 %188  ;;  %3649 = vmatprep.mubr.f32.mxu0 %v464_v1  ;;  %3889 = vmatprep.mubr.f32.mxu1 %v1702_v10  ;;  %v93_v4 = vpop.permute.xlu0 %92  ;;  %vm2838_vm6 = vcmask 326912   ;;  %vm2845_vm7 = vcmask 392512  }
  0xae   :  { %vm213_vm8 = vcmp.eq.s32.totalorder %v4997_v42, %v189_v5  ;;  %vm117_vm9 = vcmp.eq.s32.totalorder %v4997_v42, %v93_v4  ;;  %v473_v39 = vsub.f32 %v5239_v41, %v6057_v43  ;;  %v1711_v11 = vsub.f32 %v5237_v54, %v6062_v56 }
  0xaf   :  { %6214 = vst [vmem:[#allocation57_spill] sm:$0xff] %v5261_v55  ;;  %6215 = vst [vmem:[#allocation58_spill] sm:$0xff] %v5263_v53  ;;  %v5274_v49 = vsel %vm213_vm8, 1.0, %v6187_v24  ;;  %v5277_v38 = vsel %vm117_vm9, 1.0, %v6187_v24  ;;  %v6071_v1 = vand.u32 4294901760, %v5263_v53  ;;  %v6072_v5 = vand.u32 4294901760, %v5261_v55 }
  0xb0   :  { %6216 = vst [vmem:[#allocation59_spill] sm:$0xff] %v5274_v49  ;;  %6217 = vst [vmem:[#allocation60_spill] sm:$0xff] %v5277_v38  ;;  %v1531_v4 = vsel %vm258_vm0, %v5274_v49, 0  ;;  %v293_v10 = vsel %vm258_vm0, %v5277_v38, 0  ;;  %v474_v43 = vand.u32 4294901760, %v473_v39  ;;  %v1712_v41 = vand.u32 4294901760, %v1711_v11 }
  0xb1   :  { %v5285_v18 = vsub.f32 %v1531_v4, %v1531_v4  ;;  %v5287_v56 = vsub.f32 %v293_v10, %v293_v10  ;;  %v192_v54 = vpop.permute.xlu1 %191  ;;  %v96_v14 = vpop.permute.xlu0 %95  ;;  %v483_v48 = vsub.f32 %v5263_v53, %v6071_v1  ;;  %v1721_v45 = vsub.f32 %v5261_v55, %v6072_v5 }
  0xb2   :  { %vm214_vm10 = vcmp.eq.s32.totalorder %v4997_v42, %v192_v54  ;;  %3650 = vmatmul.mubr.f32.gmra.mrb[8].mxu0 %v474_v43  ;;  %3890 = vmatmul.mubr.f32.gmra.mrb[8].mxu1 %v1712_v41  ;;  %vm118_vm11 = vcmp.eq.s32.totalorder %v4997_v42, %v96_v14  ;;  %vm2852_vm8 = vcmask 458112   ;;  %vm2859_vm9 = vcmask 523712  }
  0xb3   :  { %6218 = vst [vmem:[#allocation61_spill] sm:$0xff] %v5285_v18  ;;  %6219 = vst [vmem:[#allocation62_spill] sm:$0xff] %v5287_v56  ;;  %v5298_v39 = vsel %vm214_vm10, 1.0, %v6187_v24  ;;  %v5301_v11 = vsel %vm118_vm11, 1.0, %v6187_v24  ;;  %v484_v4 = vand.u32 4294901760, %v483_v48  ;;  %v1722_v10 = vand.u32 4294901760, %v1721_v45 }
  0xb4   :  { %6220 = vst [vmem:[#allocation63_spill] sm:$0xff] %v5298_v39  ;;  %6221 = vst [vmem:[#allocation64_spill] sm:$0xff] %v5301_v11  ;;  %v1534_v1 = vsel %vm258_vm0, %v5298_v39, 0  ;;  %v296_v5 = vsel %vm258_vm0, %v5301_v11, 0  ;;  %v6077_v54 = vand.u32 4294901760, %v5287_v56  ;;  %v6082_v41 = vand.u32 4294901760, %v5285_v18 }
  0xb5   :  { %v5309_v43 = vsub.f32 %v1534_v1, %v1534_v1  ;;  %v5311_v14 = vsub.f32 %v296_v5, %v296_v5  ;;  %v195_v55 = vpop.permute.xlu1 %194  ;;  %3652 = vmatprep.mubr.f32.mxu0 %v484_v4  ;;  %3892 = vmatprep.mubr.f32.mxu1 %v1722_v10  ;;  %v99_v53 = vpop.permute.xlu0 %98  ;;  %vm2866_vm10 = vcmask 589312   ;;  %vm2873_vm11 = vcmask 654912  }
  0xb6   :  { %vm215_vm12 = vcmp.eq.s32.totalorder %v4997_v42, %v195_v55  ;;  %vm119_vm13 = vcmp.eq.s32.totalorder %v4997_v42, %v99_v53  ;;  %v493_v45 = vsub.f32 %v5287_v56, %v6077_v54  ;;  %v1731_v48 = vsub.f32 %v5285_v18, %v6082_v41 }
  0xb7   :  { %6222 = vst [vmem:[#allocation65_spill] sm:$0xff] %v5309_v43  ;;  %6223 = vst [vmem:[#allocation66_spill] sm:$0xff] %v5311_v14  ;;  %v5322_v1 = vsel %vm215_vm12, 1.0, %v6187_v24  ;;  %v5325_v5 = vsel %vm119_vm13, 1.0, %v6187_v24  ;;  %v6091_v4 = vand.u32 4294901760, %v5311_v14  ;;  %v6092_v55 = vand.u32 4294901760, %v5309_v43 }
  0xb8   :  { %6224 = vst [vmem:[#allocation67_spill] sm:$0xff] %v5322_v1  ;;  %6225 = vst [vmem:[#allocation68_spill] sm:$0xff] %v5325_v5  ;;  %v1537_v53 = vsel %vm258_vm0, %v5322_v1, 0  ;;  %v299_v10 = vsel %vm258_vm0, %v5325_v5, 0  ;;  %v494_v54 = vand.u32 4294901760, %v493_v45  ;;  %v1732_v56 = vand.u32 4294901760, %v1731_v48 }
  0xb9   :  { %v5333_v15 = vsub.f32 %v1537_v53, %v1537_v53  ;;  %v5335_v41 = vsub.f32 %v299_v10, %v299_v10  ;;  %v198_v18 = vpop.permute.xlu1 %197  ;;  %v102_v27 = vpop.permute.xlu0 %101  ;;  %v503_v36 = vsub.f32 %v5311_v14, %v6091_v4  ;;  %v1741_v61 = vsub.f32 %v5309_v43, %v6092_v55 }
  0xba   :  { %vm216_vm14 = vcmp.eq.s32.totalorder %v4997_v42, %v198_v18  ;;  %3653 = vmatmul.mubr.f32.gmra.mrb[10].mxu0 %v494_v54  ;;  %3893 = vmatmul.mubr.f32.gmra.mrb[10].mxu1 %v1732_v56  ;;  %vm120_vm15 = vcmp.eq.s32.totalorder %v4997_v42, %v102_v27  ;;  %vm2880_vm12 = vcmask 720512   ;;  %vm2887_vm13 = vcmask 786112  }
  0xbb   :  { %6226 = vst [vmem:[#allocation69_spill] sm:$0xff] %v5333_v15  ;;  %6227 = vst [vmem:[#allocation70_spill] sm:$0xff] %v5335_v41  ;;  %v5346_v45 = vsel %vm216_vm14, 1.0, %v6187_v24  ;;  %v5349_v48 = vsel %vm120_vm15, 1.0, %v6187_v24  ;;  %v504_v53 = vand.u32 4294901760, %v503_v36  ;;  %v1742_v10 = vand.u32 4294901760, %v1741_v61 }
  0xbc   :  { %6228 = vst [vmem:[#allocation71_spill] sm:$0xff] %v5346_v45  ;;  %6229 = vst [vmem:[#allocation72_spill] sm:$0xff] %v5349_v48  ;;  %v1540_v4 = vsel %vm258_vm0, %v5346_v45, 0  ;;  %v302_v55 = vsel %vm258_vm0, %v5349_v48, 0  ;;  %v6097_v18 = vand.u32 4294901760, %v5335_v41  ;;  %v6102_v56 = vand.u32 4294901760, %v5333_v15 }
  0xbd   :  { %v5357_v54 = vsub.f32 %v1540_v4, %v1540_v4  ;;  %v5359_v27 = vsub.f32 %v302_v55, %v302_v55  ;;  %v201_v43 = vpop.permute.xlu1 %200  ;;  %3655 = vmatprep.mubr.f32.mxu0 %v504_v53  ;;  %3895 = vmatprep.mubr.f32.mxu1 %v1742_v10  ;;  %v105_v14 = vpop.permute.xlu0 %104  ;;  %vm2894_vm14 = vcmask 851712   ;;  %vm2901_vm15 = vcmask 917312  }
  0xbe   :  { %vm217_vm1 = vcmp.eq.s32.totalorder %v4997_v42, %v201_v43  ;;  %vm121_vm2 = vcmp.eq.s32.totalorder %v4997_v42, %v105_v14  ;;  %v513_v36 = vsub.f32 %v5335_v41, %v6097_v18  ;;  %v1751_v61 = vsub.f32 %v5333_v15, %v6102_v56 }
  0xbf   :  { %v5370_v4 = vsel %vm217_vm1, 1.0, %v6187_v24  ;;  %v5373_v55 = vsel %vm121_vm2, 1.0, %v6187_v24  ;;  %v6114_v53 = vand.u32 4294901760, %v5359_v27  ;;  %v6111_v43 = vand.u32 4294901760, %v5357_v54 }
  0xc0   :  { %6230 = vst [vmem:[#allocation73_spill] sm:$0xff] %v5370_v4  ;;  %6231 = vst [vmem:[#allocation74_spill] sm:$0xff] %v5373_v55  ;;  %v1543_v14 = vsel %vm258_vm0, %v5370_v4, 0  ;;  %v305_v10 = vsel %vm258_vm0, %v5373_v55, 0  ;;  %v514_v18 = vand.u32 4294901760, %v513_v36  ;;  %v1752_v42 = vand.u32 4294901760, %v1751_v61 }
  0xc1   :  { %v5381_v41 = vsub.f32 %v1543_v14, %v1543_v14  ;;  %v5383_v56 = vsub.f32 %v305_v10, %v305_v10  ;;  %v523_v24 = vsub.f32 %v5359_v27, %v6114_v53  ;;  %v1761_v15 = vsub.f32 %v5357_v54, %v6111_v43 }
  0xc2   :  { %3656 = vmatmul.mubr.f32.gmra.mrb[12].mxu0 %v514_v18  ;;  %3896 = vmatmul.mubr.f32.gmra.mrb[12].mxu1 %v1752_v42  ;;  %v6241_v42 = vld [vmem:[#allocation38_spill] sm:$0xff]  ;;  %vm2908_vm1 = vcmask 982912   ;;  %vm2915_vm2 = vcmask 1048512  }
  0xc3   :  { %v524_v40 = vand.u32 4294901760, %v523_v24  ;;  %v1762_v31 = vand.u32 4294901760, %v1761_v15  ;;  %v6113_v9 = vand.u32 4294901760, %v5383_v56  ;;  %v6112_v36 = vand.u32 4294901760, %v5381_v41  ;;  %v6242_v15 = vld [vmem:[#allocation37_spill] sm:$0xff]  ;;  %v6243_v18 = vld [vmem:[#allocation42_spill] sm:$0xff] }
  0xc4   :  { %v6245_v24 = vld [vmem:[#allocation12_spill] sm:$0xff] }
  0xc5   :  { %3658 = vmatprep.mubr.f32.mxu0 %v524_v40  ;;  %3898 = vmatprep.mubr.f32.mxu1 %v1762_v31  ;;  %v533_v61 = vsub.f32 %v5383_v56, %v6113_v9  ;;  %v1771_v14 = vsub.f32 %v5381_v41, %v6112_v36  ;;  %v5482_v31 = vld [vmem:[%s5988_s2] ss:$0 sm:$0xff]  ;;  %s4509_s2 = smov [#allocation2]  }
  0xc6   :  { %2930 = vbcast.lane.b32.xlu1 %v5482_v31, 256  ;;  %2934 = vbcast.lane.b32.xlu0 %v5482_v31, 264  ;;  %v6232_v40 = vld [vmem:[#allocation31_spill] sm:$0xff]  ;;  %s3182_s17 = sshll.u32 %s4509_s2, 4  ;;  %s3183_s17 = int_to_ptr.vmem [resolvable:$true] %s3182_s17 }
  0xc7   :  { %v534_v10 = vand.u32 4294901760, %v533_v61  ;;  %v1772_v43 = vand.u32 4294901760, %v1771_v14  ;;  %v6246_v61 = vld [vmem:[#allocation13_spill] sm:$0xff]  ;;  %v6247_v14 = vld [vmem:[#allocation14_spill] sm:$0xff]  ;;  %v6249_v36 = vld [vmem:[#allocation15_spill] sm:$0xff]  ;;  %s4459_s18 = scalar_lea.vmem %s3183_s17, 16  ;;  %p4464_p1 = scmp.lt.s32.totalorder %s3183_s17, %s3183_s17 }
  0xc8   :  { %v6250_v9 = vand.u32 4294901760, %v6249_v36  ;;  %v6264_v36 = vld [vmem:[#allocation61_spill] sm:$0xff]  ;;  %p4460_p0 = scmp.ne.s32.totalorder %s3183_s17, %s4459_s18  ;;  %s4463_s19 = scalar_lea.vmem %s3183_s17, 32 }
  0xc9   :  { %3659 = vmatmul.mubr.f32.gmra.mrb[14].mxu0 %v534_v10  ;;  %3899 = vmatmul.mubr.f32.gmra.mrb[14].mxu1 %v1772_v43  ;;  %v6244_v43 = vld [vmem:[#allocation41_spill] sm:$0xff]  ;;  %v6248_v10 = vand.u32 4294901760, %v6247_v14  ;;  %v6265_v14 = vld [vmem:[#allocation66_spill] sm:$0xff]  ;;  %p4465_p2 = scmp.lt.s32.totalorder %s4463_s19, %s4459_s18 }
  0xca   :  { %3677 = vmatprep.mubr.msk.f32.mxu0 %vm258_vm0, %v5005_v63  ;;  %3917 = vmatprep.mubr.msk.f32.mxu1 %vm258_vm0, %v5021_v47 }
  0xcb   :  { %v4165_v53 = vpack.c.bf16 %v6250_v9, %v6248_v10  ;;  %v6259_v9 = vld [vmem:[#allocation54_spill] sm:$0xff]  ;;  %2938 = vbcast.lane.b32.xlu1 %v5482_v31, 272  ;;  %2946 = vbcast.lane.b32.xlu0 %v5482_v31, 288  ;;  %v6266_v10 = vld [vmem:[#allocation65_spill] sm:$0xff]  ;;  %p4466_p3 = por %p4465_p2, %p4464_p1 }
  0xcd   :  { %3678 = vmatmul.mubr.msk.f32.vlgmr.msra.gmra.mrb[0].mxu0 %vm258_vm0, %v5002_v62  ;;  %3918 = vmatmul.mubr.msk.f32.vlgmr.msra.gmra.mrb[0].mxu1 %vm258_vm0, %v5018_v60  ;;  %p4467_p4 = pnand %p4466_p3, %p4460_p0 }
  0xce   :  { %4136 = vmatpush3.bf16.msra.mxu0 %v4966_v28  ;;  %4232 = vmatpush3.bf16.msra.mxu1 %v4970_v35  ;;  %v6233_v28 = vld [vmem:[#allocation8_spill] sm:$0xff]  ;;  %v6234_v35 = vld [vmem:[#allocation9_spill] sm:$0xff] }
  0xcf   :  { %3680 = vmatprep.mubr.msk.f32.mxu0 %vm258_vm0, %v5045_v0  ;;  %3920 = vmatprep.mubr.msk.f32.mxu1 %vm258_vm0, %v5042_v16 }
  0xd0   :  { %4138 = vmatprep.subr.bf16.mxu0 %v4974_v29  ;;  %4234 = vmatprep.subr.bf16.mxu1 %v4978_v30 }
  0xd1   :  { %3681 = vmatmul.mubr.msk.f32.gmra.mrb[2].mxu0 %vm258_vm0, %v5069_v33  ;;  %3921 = vmatmul.mubr.msk.f32.gmra.mrb[2].mxu1 %vm258_vm0, %v5066_v21 }
  0xd2   :  { %3683 = vmatprep.mubr.msk.f32.mxu0 %vm258_vm0, %v5095_v7  ;;  %3923 = vmatprep.mubr.msk.f32.mxu1 %vm258_vm0, %v5092_v26 }
  0xd3   :  { %4140 = vmatpush3.bf16.msra.mxu0 %v4974_v29  ;;  %4236 = vmatpush3.bf16.msra.mxu1 %v4978_v30  ;;  %v6235_v29 = vld [vmem:[#allocation33_spill] sm:$0xff]  ;;  %v6236_v30 = vld [vmem:[#allocation32_spill] sm:$0xff] }
  0xd4   :  { %4142 = vmatprep.subr.bf16.mxu0 %v4982_v37  ;;  %4238 = vmatprep.subr.bf16.mxu1 %v4986_v46 }
  0xd5   :  { %3684 = vmatmul.mubr.msk.f32.gmra.mrb[4].mxu0 %vm258_vm0, %v5123_v20  ;;  %3924 = vmatmul.mubr.msk.f32.gmra.mrb[4].mxu1 %vm258_vm0, %v5120_v8 }
  0xd6   :  { %3686 = vmatprep.mubr.msk.f32.mxu0 %vm258_vm0, %v5151_v51  ;;  %3926 = vmatprep.mubr.msk.f32.mxu1 %vm258_vm0, %v5148_v19  ;;  %v6277_v19 = vld [vmem:[#allocation21_spill] sm:$0xff] }
  0xd7   :  { %4144 = vmatpush3.bf16.msra.mxu0 %v4982_v37  ;;  %4240 = vmatpush3.bf16.msra.mxu1 %v4986_v46  ;;  %v6237_v37 = vld [vmem:[#allocation35_spill] sm:$0xff]  ;;  %v6238_v46 = vld [vmem:[#allocation34_spill] sm:$0xff]  ;;  %v6278_v51 = vand.u32 4294901760, %v6277_v19 }
  0xd8   :  { %4146 = vmatprep.subr.bf16.mxu0 %v4990_v12  ;;  %4242 = vmatprep.subr.bf16.mxu1 %v4994_v13  ;;  %v6285_v19 = vld [vmem:[#allocation23_spill] sm:$0xff] }
  0xd9   :  { %3687 = vmatmul.mubr.msk.f32.gmra.mrb[6].mxu0 %vm258_vm0, %v5179_v52  ;;  %3927 = vmatmul.mubr.msk.f32.gmra.mrb[6].mxu1 %vm258_vm0, %v5176_v59 }
  0xda   :  { %3689 = vmatprep.mubr.msk.f32.mxu0 %vm258_vm0, %v5205_v17  ;;  %3929 = vmatprep.mubr.msk.f32.mxu1 %vm258_vm0, %v5202_v6  ;;  %v6273_v17 = vld [vmem:[#allocation19_spill] sm:$0xff] }
  0xdb   :  { %4148 = vmatpush3.bf16.msra.mxu0 %v4990_v12  ;;  %4244 = vmatpush3.bf16.msra.mxu1 %v4994_v13  ;;  %v6239_v12 = vld [vmem:[#allocation10_spill] sm:$0xff]  ;;  %v6240_v13 = vld [vmem:[#allocation11_spill] sm:$0xff]  ;;  %v6274_v59 = vand.u32 4294901760, %v6273_v17 }
  0xdc   :  { %4150 = vmatprep.subr.bf16.mxu0 %v4630_v25  ;;  %4246 = vmatprep.subr.bf16.mxu1 %v4655_v32 }
  0xdd   :  { %3690 = vmatmul.mubr.msk.f32.gmra.mrb[8].mxu0 %vm258_vm0, %v5229_v3  ;;  %3930 = vmatmul.mubr.msk.f32.gmra.mrb[8].mxu1 %vm258_vm0, %v5226_v57  ;;  %v6270_v57 = vand.u32 4294901760, %v5037_v23  ;;  %v6271_v3 = vld [vmem:[#allocation18_spill] sm:$0xff] }
  0xde   :  { %3692 = vmatprep.mubr.msk.f32.mxu0 %vm258_vm0, %v5253_v58  ;;  %3932 = vmatprep.mubr.msk.f32.mxu1 %vm258_vm0, %v5250_v2  ;;  %v6268_v2 = vld [vmem:[#allocation69_spill] sm:$0xff]  ;;  %v6269_v58 = vand.u32 4294901760, %v5013_v50  ;;  %v6272_v6 = vand.u32 4294901760, %v6271_v3  ;;  %v6282_v3 = vand.u32 4294901760, %v6232_v40 }
  0xdf   :  { %2942 = vbcast.lane.b32.xlu1 %v5482_v31, 280  ;;  %2954 = vbcast.lane.b32.xlu0 %v5482_v31, 304 }
  0xe0   :  { %v4169_v52 = vpack.c.bf16 %v6274_v59, %v6272_v6  ;;  %v6283_v59 = vld [vmem:[#allocation22_spill] sm:$0xff] }
  0xe1   :  { %3693 = vmatmul.mubr.msk.f32.gmra.mrb[10].mxu0 %vm258_vm0, %v5277_v38  ;;  %3933 = vmatmul.mubr.msk.f32.gmra.mrb[10].mxu1 %vm258_vm0, %v5274_v49  ;;  %v6258_v49 = vld [vmem:[#allocation49_spill] sm:$0xff]  ;;  %v6267_v38 = vld [vmem:[#allocation70_spill] sm:$0xff]  ;;  %v6284_v6 = vand.u32 4294901760, %v6283_v59 }
  0xe2   :  { %3695 = vmatprep.mubr.msk.f32.mxu0 %vm258_vm0, %v5301_v11  ;;  %3935 = vmatprep.mubr.msk.f32.mxu1 %vm258_vm0, %v5298_v39  ;;  %v6256_v39 = vld [vmem:[#allocation45_spill] sm:$0xff]  ;;  %v6257_v11 = vld [vmem:[#allocation50_spill] sm:$0xff] }
  0xe3   :  { %2950 = vbcast.lane.b32.xlu1 %v5482_v31, 296  ;;  %2962 = vbcast.lane.b32.xlu0 %v5482_v31, 320 }
  0xe5   :  { %3696 = vmatmul.mubr.msk.f32.gmra.mrb[12].mxu0 %vm258_vm0, %v5325_v5  ;;  %3936 = vmatmul.mubr.msk.f32.gmra.mrb[12].mxu1 %vm258_vm0, %v5322_v1  ;;  %v6255_v5 = vld [vmem:[#allocation46_spill] sm:$0xff] }
  0xe6   :  { %3698 = vmatprep.mubr.msk.f32.mxu0 %vm258_vm0, %v5349_v48  ;;  %3938 = vmatprep.mubr.msk.f32.mxu1 %vm258_vm0, %v5346_v45  ;;  %v6253_v45 = vld [vmem:[#allocation17_spill] sm:$0xff] }
  0xe7   :  { %v6254_v48 = vand.u32 4294901760, %v6253_v45  ;;  %v6261_v45 = vld [vmem:[#allocation58_spill] sm:$0xff]  ;;  %2958 = vbcast.lane.b32.xlu1 %v5482_v31, 312  ;;  %2970 = vbcast.lane.b32.xlu0 %v5482_v31, 336 }
  0xe9   :  { %3699 = vmatmul.mubr.msk.f32.gmra.mrb[14].mxu0 %vm258_vm0, %v5373_v55  ;;  %3939 = vmatmul.mubr.msk.f32.gmra.mrb[14].mxu1 %vm258_vm0, %v5370_v4  ;;  %v6251_v4 = vld [vmem:[#allocation16_spill] sm:$0xff] }
  0xea   :  { %3717 = vmatprep.mubr.f32.mxu0 %v5013_v50  ;;  %3957 = vmatprep.mubr.f32.mxu1 %v5037_v23  ;;  %v6252_v55 = vand.u32 4294901760, %v6251_v4  ;;  %v6260_v4 = vld [vmem:[#allocation53_spill] sm:$0xff]  ;;  %v6279_v50 = vand.u32 4294901760, %v5011_v34  ;;  %v6280_v23 = vand.u32 4294901760, %v5029_v22 }
  0xeb   :  { %2966 = vbcast.lane.b32.xlu1 %v5482_v31, 328  ;;  %2978 = vbcast.lane.b32.xlu0 %v5482_v31, 352 }
  0xec   :  { %v4261_v1 = vpack.c.bf16 %v6254_v48, %v6252_v55  ;;  %v6262_v48 = vld [vmem:[#allocation57_spill] sm:$0xff]  ;;  %v6263_v55 = vld [vmem:[#allocation62_spill] sm:$0xff] }
  0xed   :  { %3718 = vmatmul.mubr.f32.vlgmr.msra.gmra.mrb[0].mxu0 %v5011_v34  ;;  %3958 = vmatmul.mubr.f32.vlgmr.msra.gmra.mrb[0].mxu1 %v5029_v22  ;;  %v6287_v34 = vld [vmem:[#allocation24_spill] sm:$0xff] }
  0xee   :  { %4152 = vmatpush3.bf16.msra.mxu0 %v4630_v25  ;;  %4248 = vmatpush3.bf16.msra.mxu1 %v4655_v32 }
  0xef   :  { %3720 = vmatprep.mubr.f32.mxu0 %v5055_v44  ;;  %3960 = vmatprep.mubr.f32.mxu1 %v6232_v40  ;;  %v6294_v40 = vand.u32 4294901760, %v6238_v46 }
  0xf0   :  { %4154 = vmatprep.subr.bf16.mxu0 %v6233_v28  ;;  %4250 = vmatprep.subr.bf16.mxu1 %v6234_v35 }
  0xf1   :  { %3721 = vmatmul.mubr.f32.gmra.mrb[2].mxu0 %v6235_v29  ;;  %3961 = vmatmul.mubr.f32.gmra.mrb[2].mxu1 %v6236_v30 }
  0xf2   :  { %3723 = vmatprep.mubr.f32.mxu0 %v6237_v37  ;;  %3963 = vmatprep.mubr.f32.mxu1 %v6238_v46  ;;  %v6304_v46 = vand.u32 4294901760, %v6242_v15 }
  0xf3   :  { %4156 = vmatpush3.bf16.msra.mxu0 %v6233_v28  ;;  %4252 = vmatpush3.bf16.msra.mxu1 %v6234_v35 }
  0xf4   :  { %4158 = vmatprep.subr.bf16.mxu0 %v6239_v12  ;;  %4254 = vmatprep.subr.bf16.mxu1 %v6240_v13 }
  0xf5   :  { %3724 = vmatmul.mubr.f32.gmra.mrb[4].mxu0 %v6241_v42  ;;  %3964 = vmatmul.mubr.f32.gmra.mrb[4].mxu1 %v6242_v15  ;;  %v6310_v15 = vand.u32 4294901760, %v6258_v49 }
  0xf6   :  { %3726 = vmatprep.mubr.f32.mxu0 %v6243_v18  ;;  %3966 = vmatprep.mubr.f32.mxu1 %v6244_v43 }
  0xf7   :  { %4160 = vmatpush3.bf16.msra.mxu0 %v6239_v12  ;;  %4256 = vmatpush3.bf16.msra.mxu1 %v6240_v13 }
  0xf8   :  { %4162 = vmatprep.subr.bf16.mxu0 %v6245_v24  ;;  %4258 = vmatprep.subr.bf16.mxu1 %v6246_v61 }
  0xf9   :  { %3727 = vmatmul.mubr.f32.gmra.mrb[6].mxu0 %v6255_v5  ;;  %3967 = vmatmul.mubr.f32.gmra.mrb[6].mxu1 %v6256_v39 }
  0xfa   :  { %3729 = vmatprep.mubr.f32.mxu0 %v6257_v11  ;;  %3969 = vmatprep.mubr.f32.mxu1 %v6258_v49  ;;  %v6315_v49 = vand.u32 4294901760, %v6263_v55 }
  0xfb   :  { %4164 = vmatpush3.bf16.msra.mxu0 %v6245_v24  ;;  %4260 = vmatpush3.bf16.msra.mxu1 %v6246_v61  ;;  %v6275_v61 = vld [vmem:[#allocation20_spill] sm:$0xff] }
  0xfc   :  { %4166 = vmatprep.subr.bf16.mxu0 %v4165_v53  ;;  %4262 = vmatprep.subr.bf16.mxu1 %v4261_v1  ;;  %v6276_v24 = vand.u32 4294901760, %v6275_v61 }
  0xfd   :  { %3730 = vmatmul.mubr.f32.gmra.mrb[8].mxu0 %v6259_v9  ;;  %3970 = vmatmul.mubr.f32.gmra.mrb[8].mxu1 %v6260_v4 }
  0xfe   :  { %3732 = vmatprep.mubr.f32.mxu0 %v6261_v45  ;;  %3972 = vmatprep.mubr.f32.mxu1 %v6262_v48  ;;  %v4265_v8 = vpack.c.bf16 %v6278_v51, %v6276_v24  ;;  %v6286_v51 = vand.u32 4294901760, %v6285_v19  ;;  %v6289_v24 = vld [vmem:[#allocation25_spill] sm:$0xff] }
  0xff   :  { %v6290_v22 = vand.u32 4294901760, %v6289_v24  ;;  %v6301_v19 = vld [vmem:[#allocation29_spill] sm:$0xff]  ;;  %2974 = vbcast.lane.b32.xlu1 %v5482_v31, 344  ;;  %v6338_v24 = vld [vmem:[#allocation60_spill] sm:$0xff] }
 0x100   :  { %v4173_v17 = vpack.c.bf16 %v6286_v51, %v6284_v6 }
 0x101   :  { %3733 = vmatmul.mubr.f32.gmra.mrb[10].mxu0 %v6263_v55  ;;  %3973 = vmatmul.mubr.f32.gmra.mrb[10].mxu1 %v6264_v36  ;;  %v6321_v55 = vand.u32 4294901760, %v5359_v27 }
 0x102   :  { %3735 = vmatprep.mubr.f32.mxu0 %v6265_v14  ;;  %3975 = vmatprep.mubr.f32.mxu1 %v6266_v10 }
 0x103   :  { %2982 = vbcast.lane.b32.xlu1 %v5482_v31, 360 }
 0x105   :  { %3736 = vmatmul.mubr.f32.gmra.mrb[12].mxu0 %v6267_v38  ;;  %3976 = vmatmul.mubr.f32.gmra.mrb[12].mxu1 %v6268_v2 }
 0x106   :  { %3738 = vmatprep.mubr.f32.mxu0 %v5359_v27  ;;  %3978 = vmatprep.mubr.f32.mxu1 %v5357_v54  ;;  %v6332_v27 = vld [vmem:[#allocation48_spill] sm:$0xff] }
 0x109   :  { %3739 = vmatmul.mubr.f32.gmra.mrb[14].mxu0 %v5383_v56  ;;  %3979 = vmatmul.mubr.f32.gmra.mrb[14].mxu1 %v5381_v41 }
 0x10a   :  { %3757 = vmatprep.mubr.f32.mxu0 %v6269_v58  ;;  %3997 = vmatprep.mubr.f32.mxu1 %v6270_v57  ;;  %v6281_v57 = vand.u32 4294901760, %v5055_v44  ;;  %v6288_v58 = vand.u32 4294901760, %v6287_v34  ;;  %v6292_v44 = vand.u32 4294901760, %v6236_v30  ;;  %v6302_v30 = vand.u32 4294901760, %v6301_v19 }
 0x10b   :  { %v6307_v34 = vand.u32 4294901760, %v6255_v5  ;;  %v6312_v5 = vand.u32 4294901760, %v6260_v4  ;;  %v6318_v4 = vand.u32 4294901760, %v6266_v10  ;;  %v6324_v10 = vand.u32 4294901760, %v5381_v41  ;;  %v6329_v41 = vld [vmem:[#allocation13_spill] sm:$0xff] }
 0x10c   :  { %v4269_v61 = vpack.c.bf16 %v6290_v22, %v6288_v58  ;;  %v6308_v58 = vand.u32 4294901760, %v6256_v39  ;;  %v6313_v39 = vand.u32 4294901760, %v6261_v45  ;;  %v6319_v45 = vand.u32 4294901760, %v6267_v38  ;;  %v6328_v38 = vld [vmem:[#allocation12_spill] sm:$0xff]  ;;  %v6339_v22 = vld [vmem:[#allocation59_spill] sm:$0xff] }
 0x10d   :  { %3758 = vmatmul.mubr.f32.vlgmr.msra.gmra.mrb[0].mxu0 %v6279_v50  ;;  %3998 = vmatmul.mubr.f32.vlgmr.msra.gmra.mrb[0].mxu1 %v6280_v23  ;;  %v6295_v50 = vld [vmem:[#allocation26_spill] sm:$0xff] }
 0x10e   :  { %4168 = vmatpush3.bf16.msra.mxu0 %v4165_v53  ;;  %4264 = vmatpush3.bf16.msra.mxu1 %v4261_v1  ;;  %v6291_v1 = vand.u32 4294901760, %v6235_v29  ;;  %v6293_v53 = vand.u32 4294901760, %v6237_v37  ;;  %v6296_v23 = vand.u32 4294901760, %v6295_v50  ;;  %v6299_v29 = vld [vmem:[#allocation28_spill] sm:$0xff]  ;;  %v6303_v37 = vand.u32 4294901760, %v6241_v42  ;;  %v6345_v50 = vld [vmem:[#allocation71_spill] sm:$0xff] }
 0x10f   :  { %3760 = vmatprep.mubr.f32.mxu0 %v6281_v57  ;;  %4000 = vmatprep.mubr.f32.mxu1 %v6282_v3  ;;  %v6297_v57 = vld [vmem:[#allocation27_spill] sm:$0xff]  ;;  %v6300_v6 = vand.u32 4294901760, %v6299_v29  ;;  %v6309_v42 = vand.u32 4294901760, %v6257_v11  ;;  %v6314_v11 = vand.u32 4294901760, %v6262_v48  ;;  %v6320_v48 = vand.u32 4294901760, %v6268_v2 }
 0x110   :  { %4170 = vmatprep.subr.bf16.mxu0 %v4169_v52  ;;  %4266 = vmatprep.subr.bf16.mxu1 %v4265_v8  ;;  %v6298_v3 = vand.u32 4294901760, %v6297_v57  ;;  %v6327_v2 = vld [vmem:[#allocation39_spill] sm:$0xff]  ;;  %v6347_v57 = vld [vmem:[#allocation73_spill] sm:$0xff] }
 0x111   :  { %3761 = vmatmul.mubr.f32.gmra.mrb[2].mxu0 %v6291_v1  ;;  %4001 = vmatmul.mubr.f32.gmra.mrb[2].mxu1 %v6292_v44  ;;  %v4273_v51 = vpack.c.bf16 %v6302_v30, %v6300_v6  ;;  %v6341_v1 = vld [vmem:[#allocation63_spill] sm:$0xff]  ;;  %v6342_v44 = vld [vmem:[#allocation68_spill] sm:$0xff] }
 0x112   :  { %3763 = vmatprep.mubr.f32.mxu0 %v6293_v53  ;;  %4003 = vmatprep.mubr.f32.mxu1 %v6294_v40  ;;  %v4177_v59 = vpack.c.bf16 %v6298_v3, %v6296_v23  ;;  %v6343_v53 = vld [vmem:[#allocation67_spill] sm:$0xff]  ;;  %v6344_v40 = vld [vmem:[#allocation72_spill] sm:$0xff]  ;;  %v6346_v23 = vld [vmem:[#allocation74_spill] sm:$0xff] }
 0x113   :  { %4172 = vmatpush3.bf16.msra.mxu0 %v4169_v52  ;;  %4268 = vmatpush3.bf16.msra.mxu1 %v4265_v8  ;;  %v6305_v8 = vand.u32 4294901760, %v6243_v18  ;;  %v6306_v52 = vand.u32 4294901760, %v6244_v43  ;;  %v6311_v18 = vand.u32 4294901760, %v6259_v9  ;;  %v6316_v43 = vand.u32 4294901760, %v6264_v36 }
 0x114   :  { %4174 = vmatprep.subr.bf16.mxu0 %v4173_v17  ;;  %4270 = vmatprep.subr.bf16.mxu1 %v4269_v61  ;;  %v6317_v9 = vand.u32 4294901760, %v6265_v14  ;;  %v6322_v36 = vand.u32 4294901760, %v5357_v54  ;;  %v6323_v14 = vand.u32 4294901760, %v5383_v56  ;;  %v6330_v56 = vld [vmem:[#allocation44_spill] sm:$0xff]  ;;  %v6331_v54 = vld [vmem:[#allocation43_spill] sm:$0xff] }
 0x115   :  { %3764 = vmatmul.mubr.f32.gmra.mrb[4].mxu0 %v6303_v37  ;;  %4004 = vmatmul.mubr.f32.gmra.mrb[4].mxu1 %v6304_v46 }
 0x116   :  { %3766 = vmatprep.mubr.f32.mxu0 %v6305_v8  ;;  %4006 = vmatprep.mubr.f32.mxu1 %v6306_v52 }
 0x117   :  { %4176 = vmatpush3.bf16.msra.mxu0 %v4173_v17  ;;  %4272 = vmatpush3.bf16.msra.mxu1 %v4269_v61  ;;  %v6337_v17 = vld [vmem:[#allocation55_spill] sm:$0xff]  ;;  %v6340_v61 = vld [vmem:[#allocation64_spill] sm:$0xff] }
 0x118   :  { %4178 = vmatprep.subr.bf16.mxu0 %v4177_v59  ;;  %4274 = vmatprep.subr.bf16.mxu1 %v4273_v51 }
 0x119   :  { %3767 = vmatmul.mubr.f32.gmra.mrb[6].mxu0 %v6307_v34  ;;  %4007 = vmatmul.mubr.f32.gmra.mrb[6].mxu1 %v6308_v58 }
 0x11a   :  { %3769 = vmatprep.mubr.f32.mxu0 %v6309_v42  ;;  %4009 = vmatprep.mubr.f32.mxu1 %v6310_v15 }
 0x11b   :  { %4180 = vmatpush3.bf16.msra.mxu0 %v4177_v59  ;;  %4276 = vmatpush3.bf16.msra.mxu1 %v4273_v51 }
 0x11c   :  { %4182 = vmatprep.subr.bf16.mxu0 %v4630_v25  ;;  %4278 = vmatprep.subr.bf16.mxu1 %v4655_v32 }
 0x11d   :  { %3770 = vmatmul.mubr.f32.gmra.mrb[8].mxu0 %v6311_v18  ;;  %4010 = vmatmul.mubr.f32.gmra.mrb[8].mxu1 %v6312_v5 }
 0x11e   :  { %3772 = vmatprep.mubr.f32.mxu0 %v6313_v39  ;;  %4012 = vmatprep.mubr.f32.mxu1 %v6314_v11 }
 0x121   :  { %3773 = vmatmul.mubr.f32.gmra.mrb[10].mxu0 %v6315_v49  ;;  %4013 = vmatmul.mubr.f32.gmra.mrb[10].mxu1 %v6316_v43 }
 0x122   :  { %3775 = vmatprep.mubr.f32.mxu0 %v6317_v9  ;;  %4015 = vmatprep.mubr.f32.mxu1 %v6318_v4 }
 0x125   :  { %3776 = vmatmul.mubr.f32.gmra.mrb[12].mxu0 %v6319_v45  ;;  %4016 = vmatmul.mubr.f32.gmra.mrb[12].mxu1 %v6320_v48 }
 0x126   :  { %3778 = vmatprep.mubr.f32.mxu0 %v6321_v55  ;;  %4018 = vmatprep.mubr.f32.mxu1 %v6322_v36 }
 0x129   :  { %3779 = vmatmul.mubr.f32.gmra.mrb[14].mxu0 %v6323_v14  ;;  %4019 = vmatmul.mubr.f32.gmra.mrb[14].mxu1 %v6324_v10 }
 0x12a   :  { %3797 = vmatprep.mubr.msk.f32.mxu0 %vm258_vm0, %v5005_v63  ;;  %4037 = vmatprep.mubr.msk.f32.mxu1 %vm258_vm0, %v5021_v47 }
 0x12d   :  { %3798 = vmatmul.mubr.msk.f32.vlgmr.msra.gmra.mrb[0].mxu0 %vm258_vm0, %v5002_v62  ;;  %4038 = vmatmul.mubr.msk.f32.vlgmr.msra.gmra.mrb[0].mxu1 %vm258_vm0, %v5018_v60 }
 0x12e   :  { %4184 = vmatpush3.bf16.msra.mxu0 %v4630_v25  ;;  %4280 = vmatpush3.bf16.msra.mxu1 %v4655_v32  ;;  %v6325_v25 = vld [vmem:[#allocation36_spill] sm:$0xff] }
 0x12f   :  { %3800 = vmatprep.mubr.msk.f32.mxu0 %vm258_vm0, %v5045_v0  ;;  %4040 = vmatprep.mubr.msk.f32.mxu1 %vm258_vm0, %v5042_v16  ;;  %v6326_v32 = vld [vmem:[#allocation40_spill] sm:$0xff] }
 0x130   :  { %4186 = vmatprep.subr.bf16.mxu0 %v6233_v28  ;;  %4282 = vmatprep.subr.bf16.mxu1 %v6234_v35 }
 0x131   :  { %3801 = vmatmul.mubr.msk.f32.gmra.mrb[2].mxu0 %vm258_vm0, %v5069_v33  ;;  %4041 = vmatmul.mubr.msk.f32.gmra.mrb[2].mxu1 %vm258_vm0, %v5066_v21 }
 0x132   :  { %3803 = vmatprep.mubr.msk.f32.mxu0 %vm258_vm0, %v5095_v7  ;;  %4043 = vmatprep.mubr.msk.f32.mxu1 %vm258_vm0, %v5092_v26 }
 0x133   :  { %4188 = vmatpush3.bf16.msra.mxu0 %v6233_v28  ;;  %4284 = vmatpush3.bf16.msra.mxu1 %v6234_v35  ;;  %v6333_v28 = vld [vmem:[#allocation47_spill] sm:$0xff]  ;;  %v6334_v35 = vld [vmem:[#allocation52_spill] sm:$0xff] }
 0x134   :  { %4190 = vmatprep.subr.bf16.mxu0 %v6239_v12  ;;  %4286 = vmatprep.subr.bf16.mxu1 %v6240_v13 }
 0x135   :  { %3804 = vmatmul.mubr.msk.f32.gmra.mrb[4].mxu0 %vm258_vm0, %v5123_v20  ;;  %4044 = vmatmul.mubr.msk.f32.gmra.mrb[4].mxu1 %vm258_vm0, %v6325_v25 }
 0x136   :  { %3806 = vmatprep.mubr.msk.f32.mxu0 %vm258_vm0, %v6326_v32  ;;  %4046 = vmatprep.mubr.msk.f32.mxu1 %vm258_vm0, %v6327_v2 }
 0x137   :  { %4192 = vmatpush3.bf16.msra.mxu0 %v6239_v12  ;;  %4288 = vmatpush3.bf16.msra.mxu1 %v6240_v13  ;;  %v6335_v12 = vld [vmem:[#allocation51_spill] sm:$0xff]  ;;  %v6336_v13 = vld [vmem:[#allocation56_spill] sm:$0xff] }
 0x138   :  { %4194 = vmatprep.subr.bf16.mxu0 %v6328_v38  ;;  %4290 = vmatprep.subr.bf16.mxu1 %v6329_v41 }
 0x139   :  { %3807 = vmatmul.mubr.msk.f32.gmra.mrb[6].mxu0 %vm258_vm0, %v6330_v56  ;;  %4047 = vmatmul.mubr.msk.f32.gmra.mrb[6].mxu1 %vm258_vm0, %v6331_v54 }
 0x13a   :  { %3809 = vmatprep.mubr.msk.f32.mxu0 %vm258_vm0, %v6332_v27  ;;  %4049 = vmatprep.mubr.msk.f32.mxu1 %vm258_vm0, %v6333_v28 }
 0x13b   :  { %4196 = vmatpush3.bf16.msra.mxu0 %v6328_v38  ;;  %4292 = vmatpush3.bf16.msra.mxu1 %v6329_v41 }
 0x13d   :  { %3810 = vmatmul.mubr.msk.f32.gmra.mrb[8].mxu0 %vm258_vm0, %v6334_v35  ;;  %4050 = vmatmul.mubr.msk.f32.gmra.mrb[8].mxu1 %vm258_vm0, %v6335_v12 }
 0x13e   :  { %3812 = vmatprep.mubr.msk.f32.mxu0 %vm258_vm0, %v6336_v13  ;;  %4052 = vmatprep.mubr.msk.f32.mxu1 %vm258_vm0, %v6337_v17 }
 0x141   :  { %3813 = vmatmul.mubr.msk.f32.gmra.mrb[10].mxu0 %vm258_vm0, %v6338_v24  ;;  %4053 = vmatmul.mubr.msk.f32.gmra.mrb[10].mxu1 %vm258_vm0, %v6339_v22 }
 0x142   :  { %3815 = vmatprep.mubr.msk.f32.mxu0 %vm258_vm0, %v6340_v61  ;;  %4055 = vmatprep.mubr.msk.f32.mxu1 %vm258_vm0, %v6341_v1 }
 0x145   :  { %3816 = vmatmul.mubr.msk.f32.gmra.mrb[12].mxu0 %vm258_vm0, %v6342_v44  ;;  %4056 = vmatmul.mubr.msk.f32.gmra.mrb[12].mxu1 %vm258_vm0, %v6343_v53 }
 0x146   :  { %3818 = vmatprep.mubr.msk.f32.mxu0 %vm258_vm0, %v6344_v40  ;;  %4058 = vmatprep.mubr.msk.f32.mxu1 %vm258_vm0, %v6345_v50 }
 0x149   :  { %3819 = vmatmul.mubr.msk.f32.gmra.mrb[14].mxu0 %vm258_vm0, %v6346_v23  ;;  %4059 = vmatmul.mubr.msk.f32.gmra.mrb[14].mxu1 %vm258_vm0, %v6347_v57 }
 0x14a   :  { %3837 = vmatprep.mubr.msk.f32.mxu0 %vm258_vm0, %v5005_v63  ;;  %4077 = vmatprep.mubr.msk.f32.mxu1 %vm258_vm0, %v5021_v47 }
 0x14d   :  { %3838 = vmatmul.mubr.msk.f32.vlgmr.msra.gmra.mrb[0].mxu0 %vm258_vm0, %v5002_v62  ;;  %4078 = vmatmul.mubr.msk.f32.vlgmr.msra.gmra.mrb[0].mxu1 %vm258_vm0, %v5018_v60 }
 0x14e   :  { %3840 = vmatprep.mubr.msk.f32.mxu0 %vm258_vm0, %v5045_v0  ;;  %4080 = vmatprep.mubr.msk.f32.mxu1 %vm258_vm0, %v5042_v16 }
 0x151   :  { %3841 = vmatmul.mubr.msk.f32.gmra.mrb[2].mxu0 %vm258_vm0, %v5069_v33  ;;  %4081 = vmatmul.mubr.msk.f32.gmra.mrb[2].mxu1 %vm258_vm0, %v5066_v21 }
 0x152   :  { %3843 = vmatprep.mubr.msk.f32.mxu0 %vm258_vm0, %v5095_v7  ;;  %4083 = vmatprep.mubr.msk.f32.mxu1 %vm258_vm0, %v5092_v26 }
 0x155   :  { %3844 = vmatmul.mubr.msk.f32.gmra.mrb[4].mxu0 %vm258_vm0, %v5123_v20  ;;  %4084 = vmatmul.mubr.msk.f32.gmra.mrb[4].mxu1 %vm258_vm0, %v6325_v25 }
 0x156   :  { %3846 = vmatprep.mubr.msk.f32.mxu0 %vm258_vm0, %v6326_v32  ;;  %4086 = vmatprep.mubr.msk.f32.mxu1 %vm258_vm0, %v6327_v2 }
 0x159   :  { %3847 = vmatmul.mubr.msk.f32.gmra.mrb[6].mxu0 %vm258_vm0, %v6330_v56  ;;  %4087 = vmatmul.mubr.msk.f32.gmra.mrb[6].mxu1 %vm258_vm0, %v6331_v54 }
 0x15a   :  { %3849 = vmatprep.mubr.msk.f32.mxu0 %vm258_vm0, %v6332_v27  ;;  %4089 = vmatprep.mubr.msk.f32.mxu1 %vm258_vm0, %v6333_v28 }
 0x15d   :  { %3850 = vmatmul.mubr.msk.f32.gmra.mrb[8].mxu0 %vm258_vm0, %v6334_v35  ;;  %4090 = vmatmul.mubr.msk.f32.gmra.mrb[8].mxu1 %vm258_vm0, %v6335_v12 }
 0x15e   :  { %3852 = vmatprep.mubr.msk.f32.mxu0 %vm258_vm0, %v6336_v13  ;;  %4092 = vmatprep.mubr.msk.f32.mxu1 %vm258_vm0, %v6337_v17 }
 0x161   :  { %3853 = vmatmul.mubr.msk.f32.gmra.mrb[10].mxu0 %vm258_vm0, %v6338_v24  ;;  %4093 = vmatmul.mubr.msk.f32.gmra.mrb[10].mxu1 %vm258_vm0, %v6339_v22 }
 0x162   :  { %3855 = vmatprep.mubr.msk.f32.mxu0 %vm258_vm0, %v6340_v61  ;;  %4095 = vmatprep.mubr.msk.f32.mxu1 %vm258_vm0, %v6341_v1 }
 0x165   :  { %3856 = vmatmul.mubr.msk.f32.gmra.mrb[12].mxu0 %vm258_vm0, %v6342_v44  ;;  %4096 = vmatmul.mubr.msk.f32.gmra.mrb[12].mxu1 %vm258_vm0, %v6343_v53 }
 0x166   :  { %3858 = vmatprep.mubr.msk.f32.mxu0 %vm258_vm0, %v6344_v40  ;;  %4098 = vmatprep.mubr.msk.f32.mxu1 %vm258_vm0, %v6345_v50 }
 0x169   :  { %3859 = vmatmul.mubr.msk.f32.gmra.mrb[14].mxu0 %vm258_vm0, %v6346_v23  ;;  %4099 = vmatmul.mubr.msk.f32.gmra.mrb[14].mxu1 %vm258_vm0, %v6347_v57  ;;  %vm2817_vm0 = vcmask 130112  }
 0x220   :  { %v3839_v16 = vpop.f32.mrb[0].mxu0  ;;  %v4079_v47 = vpop.f32.mrb[0].mxu1 }
 0x221   :  { %v2728_v62 = vmul.f32 %v4079_v47, %v3839_v16  ;;  %v1395_v63 = vpop.f32.mrb[1].mxu0  ;;  %v2633_v60 = vpop.f32.mrb[1].mxu1 }
 0x222   :  { %v2727_v0 = vmul.f32 %v2633_v60, %v1395_v63  ;;  %v2931_v47 = vpop.permute.xlu1 %2930  ;;  %v2935_v60 = vpop.permute.xlu0 %2934 }
 0x223   :  { %v2747_v21 = vsel %vm2743_vm3, %v2728_v62, 0.0 }
 0x224   :  { %v4082_v33 = vpop.f32.mrb[2].mxu1  ;;  %2748 = vadd.xlane.f32.xlu1 %v2747_v21  ;;  %v3842_v26 = vpop.f32.mrb[2].mxu0  ;;  %v2744_v7 = vsel %vm2743_vm3, %v2727_v0, 0.0 }
 0x225   :  { %v2730_v20 = vmul.f32 %v4082_v33, %v3842_v26  ;;  %v2645_v3 = vpop.f32.mrb[3].mxu1  ;;  %2745 = vadd.xlane.f32.xlu0 %v2744_v7  ;;  %v1407_v59 = vpop.f32.mrb[3].mxu0 }
 0x226   :  { %v2729_v29 = vmul.f32 %v2645_v3, %v1407_v59  ;;  %v2939_v62 = vpop.permute.xlu1 %2938  ;;  %v5804_v21 = vpop.permute.xlu0 %2946 }
 0x227   :  { %v2753_v6 = vsel %vm2743_vm3, %v2730_v20, 0.0 }
 0x228   :  { %v3845_v19 = vpop.f32.mrb[4].mxu0  ;;  %v4085_v30 = vpop.f32.mrb[4].mxu1  ;;  %v2750_v58 = vsel %vm2743_vm3, %v2729_v29, 0.0 }
 0x229   :  { %v2732_v51 = vmul.f32 %v4085_v30, %v3845_v19  ;;  %v2657_v37 = vpop.f32.mrb[5].mxu1  ;;  %2754 = vadd.xlane.f32.xlu0 %v2753_v6  ;;  %v1419_v46 = vpop.f32.mrb[5].mxu0  ;;  %v6348_v6 = vlaneseq  ;;  %v6349_v30 = vld [vmem:[#allocation30_spill] sm:$0xff] }
 0x22a   :  { %v2731_v8 = vmul.f32 %v2657_v37, %v1419_v46  ;;  %v2943_v63 = vpop.permute.xlu1 %2942  ;;  %v5808_v26 = vpop.permute.xlu0 %2954 }
 0x22b   :  { %v2759_v43 = vsel %vm2743_vm3, %v2732_v51, 0.0  ;;  %v5823_v19 = vshrl.u32 %v6348_v6, 7  ;;  %v2812_v51 = vadd.s32 4294967288, %v6349_v30 }
 0x22c   :  { %v3848_v52 = vpop.f32.mrb[6].mxu0  ;;  %v4088_v34 = vpop.f32.mrb[6].mxu1  ;;  %v2756_v42 = vsel %vm2743_vm3, %v2731_v8, 0.0 }
 0x22d   :  { %v2734_v15 = vmul.f32 %v4088_v34, %v3848_v52  ;;  %v2669_v18 = vpop.f32.mrb[7].mxu1  ;;  %2751 = vadd.xlane.f32.xlu0 %v2750_v58  ;;  %2757 = vadd.xlane.f32.xlu1 %v2756_v42  ;;  %v1431_v5 = vpop.f32.mrb[7].mxu0  ;;  %v2819_v34 = vadd.s32 4294967280, %v6349_v30  ;;  %v5828_v58 = vsub.s32 %v2812_v51, %v5823_v19  ;;  %v5832_v42 = vsub.s32 %v6349_v30, %v5823_v19 }
 0x22e   :  { %v2733_v39 = vmul.f32 %v2669_v18, %v1431_v5  ;;  %v5802_v0 = vpop.permute.xlu1 %2950  ;;  %v5812_v20 = vpop.permute.xlu0 %2962  ;;  %v2833_v18 = vadd.s32 4294967264, %v6349_v30  ;;  %v2889_v51 = vadd.s32 4294967200, %v6349_v30 }
 0x22f   :  { %v2765_v10 = vsel %vm2743_vm3, %v2734_v15, 0.0  ;;  %v2826_v15 = vadd.s32 4294967272, %v6349_v30 }
 0x230   :  { %v3851_v11 = vpop.f32.mrb[8].mxu0  ;;  %v4091_v49 = vpop.f32.mrb[8].mxu1  ;;  %v2762_v9 = vsel %vm2743_vm3, %v2733_v39, 0.0  ;;  %v2847_v39 = vadd.s32 4294967248, %v6349_v30 }
 0x231   :  { %v2736_v4 = vmul.f32 %v4091_v49, %v3851_v11  ;;  %v2681_v45 = vpop.f32.mrb[9].mxu1  ;;  %2760 = vadd.xlane.f32.xlu0 %v2759_v43  ;;  %2763 = vadd.xlane.f32.xlu1 %v2762_v9  ;;  %v1443_v48 = vpop.f32.mrb[9].mxu0  ;;  %v5838_v49 = vsub.s32 %v2819_v34, %v5823_v19  ;;  %v2840_v43 = vadd.s32 4294967256, %v6349_v30 }
 0x232   :  { %v2735_v55 = vmul.f32 %v2681_v45, %v1443_v48  ;;  %v5806_v33 = vpop.permute.xlu1 %2958  ;;  %v5816_v59 = vpop.permute.xlu0 %2970  ;;  %v5844_v45 = vsub.s32 %v2826_v15, %v5823_v19  ;;  %v5847_v48 = vsub.s32 %v2833_v18, %v5823_v19 }
 0x233   :  { %v2771_v27 = vsel %vm2743_vm3, %v2736_v4, 0.0 }
 0x234   :  { %v3854_v36 = vpop.f32.mrb[10].mxu0  ;;  %v4094_v14 = vpop.f32.mrb[10].mxu1  ;;  %v2768_v25 = vsel %vm2743_vm3, %v2735_v55, 0.0 }
 0x235   :  { %v2738_v32 = vmul.f32 %v4094_v14, %v3854_v36  ;;  %v2693_v2 = vpop.f32.mrb[11].mxu1  ;;  %2766 = vadd.xlane.f32.xlu0 %v2765_v10  ;;  %2769 = vadd.xlane.f32.xlu1 %v2768_v25  ;;  %v1455_v38 = vpop.f32.mrb[11].mxu0  ;;  %v5850_v14 = vsub.s32 %v2847_v39, %v5823_v19  ;;  %v5901_v39 = vsub.s32 %v2889_v51, %v5823_v19 }
 0x236   :  { %v2737_v41 = vmul.f32 %v2693_v2, %v1455_v38  ;;  %v5810_v7 = vpop.permute.xlu1 %2966  ;;  %v5820_v29 = vpop.permute.xlu0 %2978  ;;  %v2854_v2 = vadd.s32 4294967240, %v6349_v30 }
 0x237   :  { %v2777_v61 = vsel %vm2743_vm3, %v2738_v32, 0.0  ;;  %v5854_v32 = vsub.s32 %v2840_v43, %v5823_v19 }
 0x238   :  { %v3857_v56 = vpop.f32.mrb[12].mxu0  ;;  %v4097_v54 = vpop.f32.mrb[12].mxu1  ;;  %v2774_v28 = vsel %vm2743_vm3, %v2737_v41, 0.0 }
 0x239   :  { %v2740_v35 = vmul.f32 %v4097_v54, %v3857_v56  ;;  %v2705_v12 = vpop.f32.mrb[13].mxu1  ;;  %2772 = vadd.xlane.f32.xlu0 %v2771_v27  ;;  %2775 = vadd.xlane.f32.xlu1 %v2774_v28  ;;  %v1467_v13 = vpop.f32.mrb[13].mxu0  ;;  %v2861_v56 = vadd.s32 4294967232, %v6349_v30 }
 0x23a   :  { %v2739_v17 = vmul.f32 %v2705_v12, %v1467_v13  ;;  %v5814_v3 = vpop.permute.xlu1 %2974  ;;  %v2868_v13 = vadd.s32 4294967224, %v6349_v30 }
 0x23b   :  { %v2783_v23 = vsel %vm2743_vm3, %v2740_v35, 0.0 }
 0x23c   :  { %v3860_v24 = vpop.f32.mrb[14].mxu0  ;;  %v4100_v22 = vpop.f32.mrb[14].mxu1  ;;  %v2780_v1 = vsel %vm2743_vm3, %v2739_v17, 0.0 }
 0x23d   :  { %v2742_v44 = vmul.f32 %v4100_v22, %v3860_v24  ;;  %v2717_v53 = vpop.f32.mrb[15].mxu1  ;;  %2778 = vadd.xlane.f32.xlu0 %v2777_v61  ;;  %2781 = vadd.xlane.f32.xlu1 %v2780_v1  ;;  %v1479_v40 = vpop.f32.mrb[15].mxu0  ;;  %v5868_v61 = vsub.s32 %v2854_v2, %v5823_v19 }
 0x23e   :  { %v2741_v50 = vmul.f32 %v2717_v53, %v1479_v40  ;;  %v5873_v53 = vsub.s32 %v2861_v56, %v5823_v19  ;;  %v2875_v40 = vadd.s32 4294967216, %v6349_v30 }
 0x23f   :  { %v2789_v16 = vsel %vm2743_vm3, %v2742_v44, 0.0 }
 0x240   :  { %v2786_v57 = vsel %vm2743_vm3, %v2741_v50, 0.0  ;;  %v5887_v6 = vsub.s32 %v2875_v40, %v5823_v19  ;;  %vm2922_vm3 = vcmp.lt.s32.totalorder %v6349_v30, 8 }
 0x241   :  { %2784 = vadd.xlane.f32.xlu0 %v2783_v23  ;;  %2787 = vadd.xlane.f32.xlu1 %v2786_v57 }
 0x245   :  { %2790 = vadd.xlane.f32.xlu0 %v2789_v16  ;;  %v5878_v16 = vsub.s32 %v2868_v13, %v5823_v19 }
 0x252   :  { %2990 = vbcast.lane.b32.xlu1 %v5482_v31, 376 }
 0x25b   :  { %2986 = vbcast.lane.b32.xlu0 %v5482_v31, 368  ;;  %v5818_v31 = vpop.permute.xlu1 %2982 }
 0x2b1   :  { %v2749_v37 = vpop.xlane.xlu1 %2748 }
 0x2b2   :  { %v3009_v46 = vsub.f32 %v2749_v37, %v2935_v60  ;;  %v2746_v8 = vpop.xlane.xlu0 %2745  ;;  %v2816_v9 = vrot.slane %v2749_v37, %v5828_v58  ;;  %v2882_v60 = vadd.s32 4294967208, %v6349_v30 }
 0x2b3   :  { %v3008_v52 = vsub.f32 %v2746_v8, %v2931_v47  ;;  %v2811_v4 = vrot.slane %v2746_v8, %v5832_v42 }
 0x2b4   :  { %3044 = vperm.xlu1 %4458, %v3009_v46   ;;  %v5896_v15 = vsub.s32 %v2882_v60, %v5823_v19 }
 0x2b5   :  { %3041 = vperm.xlu0 %4457, %v3008_v52   ;;  %v2818_v38 = vsel %vm2817_vm0, %v2816_v9, %v2811_v4 }
 0x2b6   :  { %v2755_v5 = vpop.xlane.xlu0 %2754 }
 0x2b7   :  { %v3011_v11 = vsub.f32 %v2755_v5, %v2943_v63  ;;  %v2830_v41 = vrot.slane %v2755_v5, %v5844_v45 }
 0x2b9   :  { %3050 = vperm.xlu1 %4458, %v3011_v11   ;;  %v2903_v11 = vadd.s32 4294967184, %v6349_v30 }
 0x2ba   :  { %v2758_v55 = vpop.xlane.xlu1 %2757  ;;  %v2752_v36 = vpop.xlane.xlu0 %2751 }
 0x2bb   :  { %v2823_v10 = vrot.slane %v2752_v36, %v5838_v49  ;;  %v3010_v25 = vsub.f32 %v2752_v36, %v2939_v62  ;;  %v2837_v54 = vrot.slane %v2758_v55, %v5847_v48  ;;  %v3012_v17 = vsub.f32 %v2758_v55, %v5804_v21 }
 0x2bd   :  { %v2825_v27 = vsel %vm2824_vm4, %v2823_v10, %v2818_v38  ;;  %3047 = vperm.xlu0 %4457, %v3010_v25   ;;  %v2910_v10 = vadd.s32 4294967176, %v6349_v30  ;;  %v5915_v38 = vsub.s32 %v2903_v11, %v5823_v19 }
 0x2be   :  { %v2832_v28 = vsel %vm2831_vm5, %v2830_v41, %v2825_v27  ;;  %v2764_v35 = vpop.xlane.xlu1 %2763  ;;  %v2761_v12 = vpop.xlane.xlu0 %2760 }
 0x2bf   :  { %v2839_v24 = vsel %vm2838_vm6, %v2837_v54, %v2832_v28  ;;  %v2844_v22 = vrot.slane %v2761_v12, %v5854_v32  ;;  %v2851_v1 = vrot.slane %v2764_v35, %v5850_v14  ;;  %v3013_v44 = vsub.f32 %v2761_v12, %v5802_v0 }
 0x2c0   :  { %v3014_v47 = vsub.f32 %v2764_v35, %v5808_v26  ;;  %v5922_v28 = vsub.s32 %v2910_v10, %v5823_v19 }
 0x2c1   :  { %v2846_v50 = vsel %vm2845_vm7, %v2844_v22, %v2839_v24  ;;  %3053 = vperm.xlu0 %4457, %v3012_v17   ;;  %3056 = vperm.xlu1 %4458, %v3013_v44  }
 0x2c2   :  { %v2770_v23 = vpop.xlane.xlu1 %2769  ;;  %v2767_v57 = vpop.xlane.xlu0 %2766  ;;  %v2853_v21 = vsel %vm2852_vm8, %v2851_v1, %v2846_v50 }
 0x2c3   :  { %v2858_v62 = vrot.slane %v2767_v57, %v5868_v61  ;;  %v3015_v63 = vsub.f32 %v2767_v57, %v5806_v33  ;;  %v2865_v0 = vrot.slane %v2770_v23, %v5873_v53  ;;  %v2896_v33 = vadd.s32 4294967192, %v6349_v30 }
 0x2c4   :  { %v3016_v8 = vsub.f32 %v2770_v23, %v5812_v20 }
 0x2c5   :  { %v2860_v37 = vsel %vm2859_vm9, %v2858_v62, %v2853_v21  ;;  %3059 = vperm.xlu0 %4457, %v3014_v47   ;;  %3062 = vperm.xlu1 %4458, %v3015_v63   ;;  %v5906_v9 = vsub.s32 %v2896_v33, %v5823_v19 }
 0x2c6   :  { %v2776_v26 = vpop.xlane.xlu1 %2775  ;;  %v2773_v46 = vpop.xlane.xlu0 %2772  ;;  %v2867_v5 = vsel %vm2866_vm10, %v2865_v0, %v2860_v37 }
 0x2c7   :  { %v2872_v52 = vrot.slane %v2773_v46, %v5878_v16  ;;  %v3017_v34 = vsub.f32 %v2773_v46, %v5810_v7  ;;  %v2879_v18 = vrot.slane %v2776_v26, %v5887_v6  ;;  %v3018_v4 = vsub.f32 %v2776_v26, %v5816_v59 }
 0x2c9   :  { %v2874_v43 = vsel %vm2873_vm11, %v2872_v52, %v2867_v5  ;;  %3065 = vperm.xlu0 %4457, %v3016_v8   ;;  %3068 = vperm.xlu1 %4458, %v3017_v34  }
 0x2ca   :  { %v2782_v20 = vpop.xlane.xlu1 %2781  ;;  %v2779_v7 = vpop.xlane.xlu0 %2778  ;;  %v2881_v2 = vsel %vm2880_vm12, %v2879_v18, %v2874_v43 }
 0x2cb   :  { %v2886_v55 = vrot.slane %v2779_v7, %v5896_v15  ;;  %v3019_v36 = vsub.f32 %v2779_v7, %v5814_v3  ;;  %v2893_v25 = vrot.slane %v2782_v20, %v5901_v39  ;;  %v3020_v54 = vsub.f32 %v2782_v20, %v5820_v29 }
 0x2cd   :  { %v2888_v41 = vsel %vm2887_vm13, %v2886_v55, %v2881_v2  ;;  %3071 = vperm.xlu0 %4457, %v3018_v4   ;;  %3074 = vperm.xlu1 %4458, %v3019_v36  }
 0x2ce   :  { %v2788_v56 = vpop.xlane.xlu1 %2787  ;;  %v2785_v59 = vpop.xlane.xlu0 %2784  ;;  %v2895_v12 = vsel %vm2894_vm14, %v2893_v25, %v2888_v41 }
 0x2cf   :  { %v2900_v3 = vrot.slane %v2785_v59, %v5906_v9  ;;  %v3021_v27 = vsub.f32 %v2785_v59, %v5818_v31  ;;  %v2907_v35 = vrot.slane %v2788_v56, %v5915_v38 }
 0x2d1   :  { %3077 = vperm.xlu0 %4457, %v3020_v54   ;;  %v2902_v13 = vsel %vm2901_vm15, %v2900_v3, %v2895_v12  ;;  %3080 = vperm.xlu1 %4458, %v3021_v27  }
 0x2d2   :  { %v2991_v17 = vpop.permute.xlu1 %2990  ;;  %v2791_v24 = vpop.xlane.xlu0 %2790  ;;  %v2909_v31 = vsel %vm2908_vm1, %v2907_v35, %v2902_v13 }
 0x2d3   :  { %v2914_v29 = vrot.slane %v2791_v24, %v5922_v28  ;;  %v3023_v22 = vsub.f32 %v2791_v24, %v2991_v17 }
 0x2d5   :  { %v2916_v19 = vsel %vm2915_vm2, %v2914_v29, %v2909_v31  ;;  %3086 = vperm.xlu1 %4458, %v3023_v22  }
 0x2d6   :  { %v2987_v1 = vpop.permute.xlu0 %2986  ;;  %2918 = vst [vmem:[#allocation2] sm:$0x1] %v2916_v19 }
 0x2d7   :  { %v3022_v44 = vsub.f32 %v2788_v56, %v2987_v1 }
 0x2d9   :  { %3083 = vperm.xlu0 %4457, %v3022_v44  }
 0x333   :  { %v3045_v40 = vpop.permute.xlu1 %3044 }
 0x334   :  { %v3042_v50 = vpop.permute.xlu0 %3041  ;;  %v3095_v47 = vrot.slane %v3045_v40, %v5828_v58 }
 0x335   :  { %v3091_v62 = vrot.slane %v3042_v50, %v5832_v42 }
 0x337   :  { %v3096_v21 = vsel %vm2817_vm0, %v3095_v47, %v3091_v62  ;;  %vm3170_vm0 = vcmask 1040384  }
 0x338   :  { %v3051_v57 = vpop.permute.xlu1 %3050 }
 0x339   :  { %v3105_v26 = vrot.slane %v3051_v57, %v5844_v45 }
 0x33c   :  { %v3048_v23 = vpop.permute.xlu0 %3047 }
 0x33d   :  { %v3100_v63 = vrot.slane %v3048_v23, %v5838_v49 }
 0x33f   :  { %v3101_v51 = vsel %vm2824_vm4, %v3100_v63, %v3096_v21 }
 0x340   :  { %v3054_v60 = vpop.permute.xlu0 %3053  ;;  %v3057_v0 = vpop.permute.xlu1 %3056  ;;  %v3106_v58 = vsel %vm2831_vm5, %v3105_v26, %v3101_v51 }
 0x341   :  { %v3110_v37 = vrot.slane %v3054_v60, %v5847_v48  ;;  %v3115_v8 = vrot.slane %v3057_v0, %v5854_v32 }
 0x343   :  { %v3111_v42 = vsel %vm2838_vm6, %v3110_v37, %v3106_v58 }
 0x344   :  { %v3060_v46 = vpop.permute.xlu0 %3059  ;;  %v3063_v33 = vpop.permute.xlu1 %3062  ;;  %v3116_v5 = vsel %vm2845_vm7, %v3115_v8, %v3111_v42 }
 0x345   :  { %v3120_v49 = vrot.slane %v3060_v46, %v5850_v14  ;;  %v3125_v18 = vrot.slane %v3063_v33, %v5868_v61 }
 0x347   :  { %v3121_v48 = vsel %vm2852_vm8, %v3120_v49, %v3116_v5 }
 0x348   :  { %v3066_v52 = vpop.permute.xlu0 %3065  ;;  %v3069_v34 = vpop.permute.xlu1 %3068  ;;  %v3126_v20 = vsel %vm2859_vm9, %v3125_v18, %v3121_v48 }
 0x349   :  { %v3130_v45 = vrot.slane %v3066_v52, %v5873_v53  ;;  %v3135_v32 = vrot.slane %v3069_v34, %v5878_v16 }
 0x34b   :  { %v3131_v7 = vsel %vm2866_vm10, %v3130_v45, %v3126_v20 }
 0x34c   :  { %v3072_v11 = vpop.permute.xlu0 %3071  ;;  %v3075_v43 = vpop.permute.xlu1 %3074  ;;  %v3136_v36 = vsel %vm2873_vm11, %v3135_v32, %v3131_v7 }
 0x34d   :  { %v3140_v14 = vrot.slane %v3072_v11, %v5887_v6  ;;  %v3145_v61 = vrot.slane %v3075_v43, %v5896_v15 }
 0x34f   :  { %v3141_v10 = vsel %vm2880_vm12, %v3140_v14, %v3136_v36 }
 0x350   :  { %v3078_v4 = vpop.permute.xlu0 %3077  ;;  %v3081_v55 = vpop.permute.xlu1 %3080  ;;  %v3146_v16 = vsel %vm2887_vm13, %v3145_v61, %v3141_v10 }
 0x351   :  { %v3150_v53 = vrot.slane %v3078_v4, %v5901_v39  ;;  %v3155_v25 = vrot.slane %v3081_v55, %v5906_v9 }
 0x353   :  { %v3151_v2 = vsel %vm2894_vm14, %v3150_v53, %v3146_v16 }
 0x354   :  { %v3087_v41 = vpop.permute.xlu1 %3086  ;;  %v3156_v15 = vsel %vm2901_vm15, %v3155_v25, %v3151_v2 }
 0x355   :  { %v3165_v59 = vrot.slane %v3087_v41, %v5922_v28 }
 0x358   :  { %v3084_v56 = vpop.permute.xlu0 %3083 }
 0x359   :  { %v3160_v6 = vrot.slane %v3084_v56, %v5915_v38 }
 0x35b   :  { %v3161_v54 = vsel %vm2908_vm1, %v3160_v6, %v3156_v15 }
 0x35c   :  { %v3166_v39 = vsel %vm2915_vm2, %v3165_v59, %v3161_v54 }
 0x35d   :  { %v3168_v3 = vsel %vm2922_vm3, %v3166_v39, 0.0 }
 0x35e   :  { %v3169_v9 = vmul.f32 %v3168_v3, %v3168_v3 }
 0x360   :  { %v3171_v27 = vsel %vm3170_vm0, %v3169_v9, 0.0 }
 0x361   :  { %3172 = vadd.xlane.f32.xlu0 %v3171_v27 }
 0x362   :  { %4470 = shalt.err (!%p4467_p4)
}
 0x363   :  { %s4471_s22 = scalar_lea.hbm %s5991_s5, 16 }
 0x364   :  { %p4472_p5 = scmp.ne.s32.totalorder %s5991_s5, %s4471_s22  ;;  %p4475_p6 = scmp.lt.u32.totalorder %s4471_s22, %s5991_s5 }
 0x366   :  { %p4477_p7 = pnand %p4475_p6, %p4472_p5 }
 0x368   :  { %4480 = shalt.err (!%p4477_p7)
}
 0x369   :  { %3185 = dma.vmem_to_hbm [thread:$0]  %s3183_s17, 16, %s5991_s5, [#allocation3]   ;;  %vm3174_vm4 = vcmask 0  }
 0x36a   :  { %s4510_s4 = smov [#allocation4]  }
 0x36b   :  { %s3192_s28 = sshll.u32 %s4510_s4, 4  ;;  %s3193_s28 = int_to_ptr.vmem [resolvable:$true] %s3192_s28 }
 0x36c   :  { %s4481_s29 = scalar_lea.vmem %s3193_s28, 16  ;;  %s4485_s30 = scalar_lea.vmem %s3193_s28, 32 }
 0x36d   :  { %p4482_p8 = scmp.ne.s32.totalorder %s3193_s28, %s4481_s29  ;;  %p4486_p9 = scmp.lt.s32.totalorder %s3193_s28, %s3193_s28 }
 0x36e   :  { %p4487_p10 = scmp.lt.s32.totalorder %s4485_s30, %s4481_s29 }
 0x370   :  { %p4488_p11 = por %p4487_p10, %p4486_p9 }
 0x372   :  { %p4489_p12 = pnand %p4488_p11, %p4482_p8 }
 0x3ee   :  { %v3173_v30 = vpop.xlane.xlu0 %3172 }
 0x3ef   :  { %3175 = vst.msk [vmem:[#allocation4] sm:$0x1] %vm3174_vm4, %v3173_v30 }
 0x3f0   :  { %4492 = shalt.err (!%p4489_p12)
}
 0x3f1   :  { %s4493_s9 = scalar_lea.hbm %s5992_s6, 16 }
 0x3f2   :  { %p4494_p13 = scmp.ne.s32.totalorder %s5992_s6, %s4493_s9  ;;  %p4497_p0 = scmp.lt.u32.totalorder %s4493_s9, %s5992_s6 }
 0x3f4   :  { %p4499_p1 = pnand %p4497_p0, %p4494_p13 }
 0x3f6   :  { %4502 = shalt.err (!%p4499_p1)
}
 0x3f7   :  { %3195 = dma.vmem_to_hbm [thread:$0]  %s3193_s28, 16, %s5992_s6, [#allocation5]  }
 0x3f8   :  { %4503 = dma.done.wait [#allocation3], 16  }
 0x3f9   :  { %4504 = vsyncadd [#allocation3], 4294967280 }
 0x3fa   :  { %4505 = dma.done.wait [#allocation5], 16  }
 0x3fb   :  { %4506 = vsyncadd [#allocation5], 4294967280 }
 0x3fc   :  { %3202 = vsyncpa [#allocation3], 1 }
 0x3fd   :  { %3203 = vsyncpa [#allocation5], 1 }

</bundles_post_ra>
